<compile_context>
chip_gen: v7x
topology: tpu7x:2x2x1
jax: 0.10.0
libtpu: 0.0.40
codegen_flags: <defaults>
</compile_context>

<pallas_src>
import jax
import jax.numpy as jnp
from jax.experimental import pallas as pl
from jax.experimental.pallas import tpu as pltpu

# Small, module-consistent hyper-parameters.
DIS_NUM = 4                    # conv1 kernel height == input H
N = 2                          # batch
C_IN = 3                       # input channels
W_IN = 201                     # input width (fixed by conv2 kernel width 201)
C1 = 10                        # conv1 out channels
C2 = 500                       # conv2 out channels / fc1 in features
C2_PAD = 512                   # hidden padded to a 128-lane multiple
NUM_CLASSES = 2
K1 = C_IN * DIS_NUM            # 12
K_FLAT = K1 * W_IN             # 2412 = fused contraction size
K_PAD = 2432                   # 19 * 128 -> unmasked lane loads, bf16 packing


def classify_kernel(x_ref, wf_ref, bf_ref, w3_ref, b3_ref, out_ref):
    #   x_ref  : (N, K_PAD)          bf16 flattened, zero-padded NCHW input
    #   wf_ref : (K_PAD, C2_PAD)     bf16 fused conv1*conv2 weight (whole thing)
    #   bf_ref : (1, C2_PAD)         f32 fused bias
    #   w3_ref : (C2_PAD, NUM_CLASSES) f32 fc1 weight
    #   b3_ref : (1, NUM_CLASSES)    f32 fc1 bias
    #   out_ref: (N, NUM_CLASSES)    f32 log-probabilities
    # Fused conv1+conv2: one bf16 MXU matmul with f32 accumulation.
    h = jnp.dot(x_ref[...], wf_ref[...], preferred_element_type=jnp.float32)
    h = jnp.maximum(h + bf_ref[...], 0.0)                       # bias + ReLU

    # fc1 + bias.
    logits = jnp.dot(h, w3_ref[...],
                     preferred_element_type=jnp.float32) + b3_ref[...]

    # Closed-form 2-class log_softmax: lse = max + log1p(exp(min - max)).
    mx = jnp.max(logits, axis=1, keepdims=True)
    mn = jnp.min(logits, axis=1, keepdims=True)
    lse = mx + jnp.log1p(jnp.exp(mn - mx))
    out_ref[...] = logits - lse


def prepare_params(params):
    """One-time prep: algebraically fuse conv1*conv2, pad, cast weight to bf16.

    Run this ONCE (outside the per-forward path). Returns the tensors the
    kernel consumes directly.
    """
    w1, b1, w2, b2, w3, b3 = params
    hp = jax.lax.Precision.HIGHEST

    # x2[n,o] = sum_{c,kh,w} inp[n,c,kh,w] * Wf[(c,kh,w),o] + bf[o]
    #   Wf[(c,kh),w,o] = sum_{c1} w1[c1,(c,kh)] * w2[o,c1,w]
    #   bf[o]          = sum_{c1,w} b1[c1] * w2[o,c1,w] + b2[o]
    w1m = w1.reshape(C1, K1).astype(jnp.float32)                  # (10, 12)
    w2m = w2.reshape(C2, C1, W_IN).astype(jnp.float32)            # (500, 10, 201)
    wf = jnp.einsum('ck,ocw->kwo', w1m, w2m,
                    precision=hp).reshape(K_FLAT, C2)             # (2412, 500)
    bf = jnp.einsum('c,ocw->o', b1.astype(jnp.float32), w2m,
                    precision=hp) + b2.astype(jnp.float32)        # (500,)

    # Pad contraction 2412 -> 2432 (zero rows, matched by zero-padded input)
    # and hidden 500 -> 512 (zero cols, zero bias -> ReLU(0)=0 -> inert).
    wf_p = jnp.pad(wf, ((0, K_PAD - K_FLAT),
                        (0, C2_PAD - C2))).astype(jnp.bfloat16)   # (2432, 512)
    bf_p = jnp.pad(bf, (0, C2_PAD - C2)).reshape(1, C2_PAD).astype(jnp.float32)
    w3_p = jnp.pad(w3.T.astype(jnp.float32),
                   ((0, C2_PAD - C2), (0, 0)))                    # (512, 2)
    b3_r = b3.reshape(1, NUM_CLASSES).astype(jnp.float32)
    return wf_p, bf_p, w3_p, b3_r


def classify_forward(x, prepared):
    """x: (N, 3, dis_num, 201) NCHW float32; prepared = prepare_params(params)."""
    wf_p, bf_p, w3_p, b3_r = prepared
    n = x.shape[0]
    assert x.shape[1:] == (C_IN, DIS_NUM, W_IN)

    # Whole batch as one lane-major slab (pure reshape + zero-pad, no compute);
    # bf16 LHS so the big matmul is a genuine bf16 MXU op.
    xf = x.reshape(n, K_FLAT).astype(jnp.bfloat16)
    xf = jnp.pad(xf, ((0, 0), (0, K_PAD - K_FLAT)))               # (N, 2432)

    # Single grid step: every operand (weight ~2.4 MiB bf16) fits VMEM, so one
    # contiguous weight DMA, no accumulator, no per-step pipeline overhead.
    return pl.pallas_call(
        classify_kernel,
        out_shape=jax.ShapeDtypeStruct((n, NUM_CLASSES), jnp.float32),
        grid=(1,),
        in_specs=[
            pl.BlockSpec((n, K_PAD), lambda j: (0, 0)),           # input
            pl.BlockSpec((K_PAD, C2_PAD), lambda j: (0, 0)),      # fused weight
            pl.BlockSpec((1, C2_PAD), lambda j: (0, 0)),          # fused bias
            pl.BlockSpec((C2_PAD, NUM_CLASSES), lambda j: (0, 0)),  # fc1 weight
            pl.BlockSpec((1, NUM_CLASSES), lambda j: (0, 0)),     # fc1 bias
        ],
        out_specs=pl.BlockSpec((n, NUM_CLASSES), lambda j: (0, 0)),
        compiler_params=pltpu.CompilerParams(
            dimension_semantics=("arbitrary",)),
    )(xf, wf_p, bf_p, w3_p, b3_r)


def reference_forward(x, params):
    """Plain-JAX f32 reference mirroring the PyTorch forward."""
    w1, b1, w2, b2, w3, b3 = params
    hp = jax.lax.Precision.HIGHEST
    a = x.reshape(x.shape[0], K1, W_IN)
    x1 = jnp.einsum('nkw,ok->now', a, w1.reshape(C1, K1),
                    precision=hp) + b1[None, :, None]              # conv1
    x2 = jnp.einsum('ncw,ocw->no', x1, w2.reshape(C2, C1, W_IN),
                    precision=hp) + b2[None, :]                    # conv2
    h = jnp.maximum(x2, 0.0)                                       # ReLU
    logits = jnp.dot(h, w3.T, precision=hp) + b3[None, :]          # fc1
    return jax.nn.log_softmax(logits, axis=1)


if __name__ == "__main__":
    key = jax.random.PRNGKey(0)
    kx, k1, k2, k3, k4, k5, k6 = jax.random.split(key, 7)

    # Example input (NCHW), small shapes consistent with the module.
    x = jax.random.normal(kx, (N, C_IN, DIS_NUM, W_IN), dtype=jnp.float32)

    # Deterministic synthetic parameters (same shapes as nn.Module.__init__).
    w1 = 0.15 * jax.random.normal(k1, (C1, C_IN, DIS_NUM, 1), dtype=jnp.float32)
    b1 = 0.05 * jax.random.normal(k2, (C1,), dtype=jnp.float32)
    w2 = 0.05 * jax.random.normal(k3, (C2, C1, 1, W_IN), dtype=jnp.float32)
    b2 = 0.05 * jax.random.normal(k4, (C2,), dtype=jnp.float32)
    w3 = 0.05 * jax.random.normal(k5, (NUM_CLASSES, C2), dtype=jnp.float32)
    b3 = 0.05 * jax.random.normal(k6, (NUM_CLASSES,), dtype=jnp.float32)
    params = (w1, b1, w2, b2, w3, b3)

    # Weight fusion / padding / bf16 cast happens once, outside the forward.
    prepared = jax.block_until_ready(prepare_params(params))

    out = jax.block_until_ready(classify_forward(x, prepared))
    ref = reference_forward(x, params)

    assert out.shape == (N, NUM_CLASSES)
    # bf16 weight/activation cast on the fused matmul -> ~1e-2-level deviation
    # from the pure-f32 reference; accumulation is still f32.
    if not bool(jnp.allclose(out, ref, atol=5e-2, rtol=5e-2)):
        raise AssertionError(f"kernel/reference mismatch:\n{out}\n{ref}")
    print("KERNEL_OK")
</pallas_src>

<mosaic_0001>
module attributes {stable_mosaic.version = 11 : i64} {
  func.func @classify_kernel(%arg0: i32, %arg1: memref<2x2432xbf16, #tpu.memory_space<vmem>>, %arg2: memref<2432x512xbf16, #tpu.memory_space<vmem>>, %arg3: memref<1x512xf32, #tpu.memory_space<vmem>>, %arg4: memref<512x2xf32, #tpu.memory_space<vmem>>, %arg5: memref<1x2xf32, #tpu.memory_space<vmem>>, %arg6: memref<2x2xf32, #tpu.memory_space<vmem>>) attributes {dimension_semantics = [#tpu.dimension_semantics<arbitrary>], iteration_bounds = array<i64: 1>, scalar_prefetch = 0 : i64, scratch_operands = 0 : i64, tpu.core_type = #tpu.core_type<tc>, window_params = [{pipeline_mode = #tpu.pipeline_mode<synchronous>, transform_indices = @transform_0, window_bounds = array<i64: 2, 2432>}, {pipeline_mode = #tpu.pipeline_mode<synchronous>, transform_indices = @transform_1, window_bounds = array<i64: 2432, 512>}, {pipeline_mode = #tpu.pipeline_mode<synchronous>, transform_indices = @transform_2, window_bounds = array<i64: 1, 512>}, {pipeline_mode = #tpu.pipeline_mode<synchronous>, transform_indices = @transform_3, window_bounds = array<i64: 512, 2>}, {pipeline_mode = #tpu.pipeline_mode<synchronous>, transform_indices = @transform_4, window_bounds = array<i64: 1, 2>}, {pipeline_mode = #tpu.pipeline_mode<synchronous>, transform_indices = @transform_5, window_bounds = array<i64: 2, 2>}]} {
    %c0 = arith.constant 0 : index
    %c0_0 = arith.constant 0 : index
    %0 = vector.load %arg1[%c0, %c0_0] : memref<2x2432xbf16, #tpu.memory_space<vmem>>, vector<2x2432xbf16>
    %c0_1 = arith.constant 0 : index
    %c0_2 = arith.constant 0 : index
    %1 = vector.load %arg2[%c0_1, %c0_2] : memref<2432x512xbf16, #tpu.memory_space<vmem>>, vector<2432x512xbf16>
    %cst = arith.constant dense<0.000000e+00> : vector<2x512xf32>
    %2 = tpu.matmul %0, %1, %cst {dimension_numbers = #tpu.dot_dimension_numbers<[1], [0], [0], [1], [0, 0, 1, 1], [], []>} : vector<2x2432xbf16>, vector<2432x512xbf16>, vector<2x512xf32> -> vector<2x512xf32>
    %c0_3 = arith.constant 0 : index
    %c0_4 = arith.constant 0 : index
    %3 = vector.load %arg3[%c0_3, %c0_4] : memref<1x512xf32, #tpu.memory_space<vmem>>, vector<1x512xf32>
    %4 = vector.broadcast %3 : vector<1x512xf32> to vector<2x512xf32>
    %5 = arith.addf %2, %4 : vector<2x512xf32>
    %cst_5 = arith.constant 0.000000e+00 : f32
    %6 = vector.broadcast %cst_5 : f32 to vector<2x512xf32>
    %7 = arith.maximumf %5, %6 : vector<2x512xf32>
    %c0_6 = arith.constant 0 : index
    %c0_7 = arith.constant 0 : index
    %8 = vector.load %arg4[%c0_6, %c0_7] : memref<512x2xf32, #tpu.memory_space<vmem>>, vector<512x2xf32>
    %cst_8 = arith.constant dense<0.000000e+00> : vector<2x2xf32>
    %9 = tpu.matmul %7, %8, %cst_8 {dimension_numbers = #tpu.dot_dimension_numbers<[1], [0], [0], [1], [0, 0, 1, 1], [], []>} : vector<2x512xf32>, vector<512x2xf32>, vector<2x2xf32> -> vector<2x2xf32>
    %c0_9 = arith.constant 0 : index
    %c0_10 = arith.constant 0 : index
    %10 = vector.load %arg5[%c0_9, %c0_10] : memref<1x2xf32, #tpu.memory_space<vmem>>, vector<1x2xf32>
    %11 = vector.broadcast %10 : vector<1x2xf32> to vector<2x2xf32>
    %12 = arith.addf %9, %11 : vector<2x2xf32>
    %cst_11 = arith.constant dense<0xFF800000> : vector<2xf32>
    %13 = vector.multi_reduction <maximumf>, %12, %cst_11 [1] : vector<2x2xf32> to vector<2xf32>
    %14 = vector.shape_cast %13 : vector<2xf32> to vector<2x1xf32>
    %cst_12 = arith.constant dense<0x7F800000> : vector<2xf32>
    %15 = vector.multi_reduction <minimumf>, %12, %cst_12 [1] : vector<2x2xf32> to vector<2xf32>
    %16 = vector.shape_cast %15 : vector<2xf32> to vector<2x1xf32>
    %17 = arith.subf %16, %14 : vector<2x1xf32>
    %18 = math.exp %17 : vector<2x1xf32>
    %19 = math.log1p %18 : vector<2x1xf32>
    %20 = arith.addf %14, %19 : vector<2x1xf32>
    %21 = vector.broadcast %20 : vector<2x1xf32> to vector<2x2xf32>
    %22 = arith.subf %12, %21 : vector<2x2xf32>
    %c0_13 = arith.constant 0 : index
    %c0_14 = arith.constant 0 : index
    %23 = vector.load %arg6[%c0_13, %c0_14] : memref<2x2xf32, #tpu.memory_space<vmem>>, vector<2x2xf32>
    tpu.vector_store %arg6[%c0_13, %c0_14], %22 {strides = array<i32>} : memref<2x2xf32, #tpu.memory_space<vmem>>, vector<2x2xf32>,
    return
  }
  func.func @transform_0(%arg0: i32) -> (i32, i32) {
    %c0_i32 = arith.constant 0 : i32
    %c0_i32_0 = arith.constant 0 : i32
    %c0_i32_1 = arith.constant 0 : i32
    return %c0_i32, %c0_i32_0 : i32, i32
  }
  func.func @transform_1(%arg0: i32) -> (i32, i32) {
    %c0_i32 = arith.constant 0 : i32
    %c0_i32_0 = arith.constant 0 : i32
    %c0_i32_1 = arith.constant 0 : i32
    return %c0_i32, %c0_i32_0 : i32, i32
  }
  func.func @transform_2(%arg0: i32) -> (i32, i32) {
    %c0_i32 = arith.constant 0 : i32
    %c0_i32_0 = arith.constant 0 : i32
    %c0_i32_1 = arith.constant 0 : i32
    return %c0_i32, %c0_i32_0 : i32, i32
  }
  func.func @transform_3(%arg0: i32) -> (i32, i32) {
    %c0_i32 = arith.constant 0 : i32
    %c0_i32_0 = arith.constant 0 : i32
    %c0_i32_1 = arith.constant 0 : i32
    return %c0_i32, %c0_i32_0 : i32, i32
  }
  func.func @transform_4(%arg0: i32) -> (i32, i32) {
    %c0_i32 = arith.constant 0 : i32
    %c0_i32_0 = arith.constant 0 : i32
    %c0_i32_1 = arith.constant 0 : i32
    return %c0_i32, %c0_i32_0 : i32, i32
  }
  func.func @transform_5(%arg0: i32) -> (i32, i32) {
    %c0_i32 = arith.constant 0 : i32
    %c0_i32_0 = arith.constant 0 : i32
    %c0_i32_1 = arith.constant 0 : i32
    return %c0_i32, %c0_i32_0 : i32, i32
  }
}

</mosaic_0001>

<bundles_post_ra>
// kernel: tpu_custom_call.1
= control target key start
LH: loop header
LB: loop body
LE: loop exit
PB: predicated region body
PF: predicated region fallthrough
CT: control target
= control target key end

     0   :  { %10 = vsyncpa [#allocation3], 0  ;;  %s7221_s0 = inlined_call_operand.hbm [shape: bf16[2,2432], index: 0, kind: input, shape index: {}]   ;;  %s7222_s1 = inlined_call_operand.hbm [shape: bf16[2432,512], index: 1, kind: input, shape index: {}]   ;;  %s7223_s2 = inlined_call_operand.hbm [shape: f32[1,512], index: 2, kind: input, shape index: {}]   ;;  %s7224_s3 = inlined_call_operand.vmem [shape: f32[512,2], index: 3, kind: input, shape index: {}]   ;;  %s7225_s4 = inlined_call_operand.hbm [shape: f32[1,2], index: 4, kind: input, shape index: {}]   ;;  %s7226_s5 = inlined_call_operand.hbm [shape: f32[2,2], index: 5, kind: output, shape index: {}]  }
   0x1   :  { %11 = vsyncpa [#allocation6], 0 }
   0x2   :  { %12 = vsyncpa [#allocation9], 0 }
   0x3   :  { %13 = vsyncpa [#allocation4], 0  ;;  %s6826_s18 = smov [#allocation5]   ;;  %s6708_s22 = scalar_lea.hbm %s7222_s1, 77824 }
   0x4   :  { %s29_s19 = sshll.u32 %s6826_s18, 4  ;;  %p6709_p0 = scmp.ne.s32.totalorder %s7222_s1, %s6708_s22  ;;  %s30_s19 = int_to_ptr.vmem [resolvable:$true] %s29_s19 }
   0x5   :  { %p6712_p1 = scmp.lt.u32.totalorder %s6708_s22, %s7222_s1 }
   0x7   :  { %p6714_p2 = pnand %p6712_p1, %p6709_p0 }
   0x9   :  { %6717 = shalt.err (!%p6714_p2)
}
   0xa   :  { %s6718_s27 = scalar_lea.vmem %s30_s19, 77824  ;;  %p6723_p4 = scmp.lt.s32.totalorder %s30_s19, %s30_s19 }
   0xb   :  { %p6719_p3 = scmp.ne.s32.totalorder %s30_s19, %s6718_s27  ;;  %p6724_p5 = scmp.lt.s32.totalorder %s6718_s27, %s6718_s27 }
   0xd   :  { %p6725_p6 = por %p6724_p5, %p6723_p4 }
   0xf   :  { %p6726_p7 = pnand %p6725_p6, %p6719_p3 }
  0x11   :  { %6729 = shalt.err (!%p6726_p7)
}
  0x12   :  { %s6827_s28 = smov 256   ;;  %s6828_s29 = smov 16  }
  0x13   :  { %35 = dma.hbm_to_vmem [thread:$0]  %s7222_s1, 77824, %s30_s19, [#allocation6], %s6827_s28, %s6827_s28, %s6828_s29  }
  0x14   :  { %s6829_s7 = smov [#allocation2]   ;;  %s6830_s9 = smov [#allocation7]  }
  0x15   :  { %s20_s8 = sshll.u32 %s6829_s7, 4  ;;  %s42_s10 = sshll.u32 %s6830_s9, 4  ;;  %s21_s8 = int_to_ptr.vmem [resolvable:$true] %s20_s8  ;;  %s43_s10 = int_to_ptr.vmem [resolvable:$true] %s42_s10 }
  0x16   :  { %s6730_s13 = scalar_lea.hbm %s7221_s0, 304 }
  0x17   :  { %p6731_p8 = scmp.ne.s32.totalorder %s7221_s0, %s6730_s13  ;;  %p6734_p9 = scmp.lt.u32.totalorder %s6730_s13, %s7221_s0 }
  0x19   :  { %p6736_p10 = pnand %p6734_p9, %p6731_p8 }
  0x1b   :  { %6739 = shalt.err (!%p6736_p10)
}
  0x1c   :  { %s6740_s1 = scalar_lea.vmem %s21_s8, 304  ;;  %s6744_s18 = scalar_lea.vmem %s21_s8, 320 }
  0x1d   :  { %p6741_p11 = scmp.ne.s32.totalorder %s21_s8, %s6740_s1  ;;  %p6745_p12 = scmp.lt.s32.totalorder %s21_s8, %s21_s8 }
  0x1e   :  { %p6746_p13 = scmp.lt.s32.totalorder %s6744_s18, %s6740_s1 }
  0x20   :  { %p6747_p0 = por %p6746_p13, %p6745_p12 }
  0x22   :  { %p6748_p1 = pnand %p6747_p0, %p6741_p11 }
  0x24   :  { %6751 = shalt.err (!%p6748_p1)
}
  0x25   :  { %23 = dma.hbm_to_vmem [thread:$0]  %s7221_s0, 304, %s21_s8, [#allocation3]  }
  0x26   :  { %s6752_s23 = scalar_lea.hbm %s7223_s2, 64 }
  0x27   :  { %p6753_p2 = scmp.ne.s32.totalorder %s7223_s2, %s6752_s23  ;;  %p6756_p3 = scmp.lt.u32.totalorder %s6752_s23, %s7223_s2 }
  0x29   :  { %p6758_p4 = pnand %p6756_p3, %p6753_p2 }
  0x2b   :  { %6761 = shalt.err (!%p6758_p4)
}
  0x2c   :  { %s6762_s28 = scalar_lea.vmem %s43_s10, 64  ;;  %p6767_p6 = scmp.lt.s32.totalorder %s43_s10, %s43_s10 }
  0x2d   :  { %p6763_p5 = scmp.ne.s32.totalorder %s43_s10, %s6762_s28  ;;  %p6768_p7 = scmp.lt.s32.totalorder %s6762_s28, %s6762_s28 }
  0x2f   :  { %p6769_p8 = por %p6768_p7, %p6767_p6 }
  0x31   :  { %p6770_p9 = pnand %p6769_p8, %p6763_p5 }
  0x33   :  { %6773 = shalt.err (!%p6770_p9)
}
  0x34   :  { %45 = dma.hbm_to_vmem [thread:$0]  %s7223_s2, 64, %s43_s10, [#allocation6]  }
  0x35   :  { %s6831_s30 = smov [#allocation8]   ;;  %s6774_s9 = scalar_lea.hbm %s7225_s4, 16 }
  0x36   :  { %s54_s6 = sshll.u32 %s6831_s30, 4  ;;  %p6775_p10 = scmp.ne.s32.totalorder %s7225_s4, %s6774_s9  ;;  %s55_s6 = int_to_ptr.vmem [resolvable:$true] %s54_s6 }
  0x37   :  { %p6778_p11 = scmp.lt.u32.totalorder %s6774_s9, %s7225_s4 }
  0x39   :  { %p6780_p12 = pnand %p6778_p11, %p6775_p10 }
  0x3b   :  { %6783 = shalt.err (!%p6780_p12)
}
  0x3c   :  { %s6784_s15 = scalar_lea.vmem %s55_s6, 16  ;;  %s6788_s2 = scalar_lea.vmem %s55_s6, 32 }
  0x3d   :  { %p6785_p13 = scmp.ne.s32.totalorder %s55_s6, %s6784_s15  ;;  %p6789_p0 = scmp.lt.s32.totalorder %s55_s6, %s55_s6 }
  0x3e   :  { %p6790_p1 = scmp.lt.s32.totalorder %s6788_s2, %s6784_s15 }
  0x40   :  { %p6791_p2 = por %p6790_p1, %p6789_p0 }
  0x42   :  { %p6792_p3 = pnand %p6791_p2, %p6785_p13 }
  0x44   :  { %6795 = shalt.err (!%p6792_p3)
}
  0x45   :  { %57 = dma.hbm_to_vmem [thread:$0]  %s7225_s4, 16, %s55_s6, [#allocation9]  }
  0x46   :  { %6818 = dma.done.wait [#allocation3], 304  }
  0x47   :  { %6819 = vsyncadd [#allocation3], 4294966992 }
  0x48   :  { %6820 = dma.done.wait [#allocation6], 77888  }
  0x49   :  { %6821 = vsyncadd [#allocation6], 4294889408 }
  0x4a   :  { %6822 = dma.done.wait [#allocation9], 16  }
  0x4b   :  { %6823 = vsyncadd [#allocation9], 4294967280  ;;  %v5790_v0 = vld [vmem:[#allocation5 + $0x4] ss:$16 sps:$4 sm:$0xff]   ;;  %v5792_v1 = vld [vmem:[#allocation5 + $0xc] ss:$16 sps:$4 sm:$0xff]   ;;  %v684_v36 = vlaneseq }
  0x4c   :  { %3887 = vmatprep.subr.bf16.mxu0 %v5790_v0  ;;  %v5794_v2 = vld [vmem:[#allocation5] ss:$16 sps:$4 sm:$0xff]   ;;  %v5795_v3 = vld [vmem:[#allocation5 + $0x8] ss:$16 sps:$4 sm:$0xff]   ;;  %4297 = vmatprep.subr.bf16.mxu1 %v5792_v1  ;;  %v5796_v4 = vld [vmem:[#allocation5 + $0x24] ss:$16 sps:$4 sm:$0xff]  }
  0x4d   :  { %3888 = vmatpush1.bf16.msra.mxu0 %v5794_v2  ;;  %4298 = vmatpush1.bf16.msra.mxu1 %v5795_v3  ;;  %v5798_v5 = vld [vmem:[#allocation5 + $0x2c] ss:$16 sps:$4 sm:$0xff]   ;;  %v5800_v6 = vld [vmem:[#allocation5 + $0x20] ss:$16 sps:$4 sm:$0xff]   ;;  %v5801_v7 = vld [vmem:[#allocation5 + $0x28] ss:$16 sps:$4 sm:$0xff]  }
  0x4e   :  { %3889 = vmatprep.subr.bf16.mxu0 %v5796_v4  ;;  %4299 = vmatprep.subr.bf16.mxu1 %v5798_v5  ;;  %v5802_v8 = vld [vmem:[#allocation5 + $0x44] ss:$16 sps:$4 sm:$0xff]   ;;  %v5804_v9 = vld [vmem:[#allocation5 + $0x4c] ss:$16 sps:$4 sm:$0xff]   ;;  %v5806_v10 = vld [vmem:[#allocation5 + $0x40] ss:$16 sps:$4 sm:$0xff]  }
  0x4f   :  { %v5807_v11 = vld [vmem:[#allocation5 + $0x48] ss:$16 sps:$4 sm:$0xff]   ;;  %v5808_v12 = vld [vmem:[#allocation5 + $0x64] ss:$16 sps:$4 sm:$0xff]   ;;  %v5810_v13 = vld [vmem:[#allocation5 + $0x6c] ss:$16 sps:$4 sm:$0xff]  }
  0x50   :  { %v5812_v14 = vld [vmem:[#allocation5 + $0x60] ss:$16 sps:$4 sm:$0xff]   ;;  %v5813_v15 = vld [vmem:[#allocation5 + $0x68] ss:$16 sps:$4 sm:$0xff]   ;;  %v5814_v16 = vld [vmem:[#allocation5 + $0x84] ss:$16 sps:$4 sm:$0xff]  }
  0x51   :  { %3890 = vmatpush1.bf16.msra.mxu0 %v5800_v6  ;;  %4300 = vmatpush1.bf16.msra.mxu1 %v5801_v7  ;;  %v5816_v17 = vld [vmem:[#allocation5 + $0x8c] ss:$16 sps:$4 sm:$0xff]   ;;  %v5818_v18 = vld [vmem:[#allocation5 + $0x80] ss:$16 sps:$4 sm:$0xff]   ;;  %v5819_v19 = vld [vmem:[#allocation5 + $0x88] ss:$16 sps:$4 sm:$0xff]  }
  0x52   :  { %3891 = vmatprep.subr.bf16.mxu0 %v5802_v8  ;;  %4301 = vmatprep.subr.bf16.mxu1 %v5804_v9  ;;  %v5820_v20 = vld [vmem:[#allocation5 + $0xa4] ss:$16 sps:$4 sm:$0xff]   ;;  %v5822_v21 = vld [vmem:[#allocation5 + $0xac] ss:$16 sps:$4 sm:$0xff]   ;;  %v5824_v22 = vld [vmem:[#allocation5 + $0xa0] ss:$16 sps:$4 sm:$0xff]  }
  0x53   :  { %v5825_v23 = vld [vmem:[#allocation5 + $0xa8] ss:$16 sps:$4 sm:$0xff]   ;;  %v5826_v24 = vld [vmem:[#allocation5 + $0xc4] ss:$16 sps:$4 sm:$0xff]   ;;  %v5828_v25 = vld [vmem:[#allocation5 + $0xcc] ss:$16 sps:$4 sm:$0xff]  }
  0x54   :  { %v5830_v26 = vld [vmem:[#allocation5 + $0xc0] ss:$16 sps:$4 sm:$0xff]   ;;  %v5831_v27 = vld [vmem:[#allocation5 + $0xc8] ss:$16 sps:$4 sm:$0xff]   ;;  %v5832_v28 = vld [vmem:[#allocation5 + $0xe4] ss:$16 sps:$4 sm:$0xff]  }
  0x55   :  { %3892 = vmatpush1.bf16.msra.mxu0 %v5806_v10  ;;  %4302 = vmatpush1.bf16.msra.mxu1 %v5807_v11  ;;  %v5834_v29 = vld [vmem:[#allocation5 + $0xec] ss:$16 sps:$4 sm:$0xff]   ;;  %v5836_v30 = vld [vmem:[#allocation5 + $0xe0] ss:$16 sps:$4 sm:$0xff]   ;;  %v5837_v31 = vld [vmem:[#allocation5 + $0xe8] ss:$16 sps:$4 sm:$0xff]  }
  0x56   :  { %3893 = vmatprep.subr.bf16.mxu0 %v5808_v12  ;;  %4303 = vmatprep.subr.bf16.mxu1 %v5810_v13  ;;  %v5838_v32 = vld [vmem:[#allocation5 + $0x104] ss:$16 sps:$4 sm:$0xff]   ;;  %v5840_v33 = vld [vmem:[#allocation5 + $0x10c] ss:$16 sps:$4 sm:$0xff]   ;;  %v5842_v34 = vld [vmem:[#allocation5 + $0x100] ss:$16 sps:$4 sm:$0xff]  }
  0x57   :  { %v5843_v35 = vld [vmem:[#allocation5 + $0x108] ss:$16 sps:$4 sm:$0xff]   ;;  %v6832_v37 = vmov 1966171168   ;;  %v5844_v39 = vld [vmem:[#allocation5 + $0x124] ss:$16 sps:$4 sm:$0xff]  }
  0x58   :  { %v709_v38 = vunpack.c.l.s4 %v6832_v37  ;;  %v5846_v40 = vld [vmem:[#allocation5 + $0x12c] ss:$16 sps:$4 sm:$0xff]   ;;  %v5848_v41 = vld [vmem:[#allocation5 + $0x120] ss:$16 sps:$4 sm:$0xff]   ;;  %v6913_v42 = vshrl.u32 %v684_v36, 7  ;;  %vm4922_vm0 = vcmask 9216  }
  0x59   :  { %3894 = vmatpush1.bf16.msra.mxu0 %v5812_v14  ;;  %4304 = vmatpush1.bf16.msra.mxu1 %v5813_v15  ;;  %v5849_v44 = vld [vmem:[#allocation5 + $0x128] ss:$16 sps:$4 sm:$0xff]   ;;  %v5850_v45 = vld [vmem:[#allocation5 + $0x144] ss:$16 sps:$4 sm:$0xff]   ;;  %v5852_v46 = vld [vmem:[#allocation5 + $0x14c] ss:$16 sps:$4 sm:$0xff]  }
  0x5a   :  { %3895 = vmatprep.subr.bf16.mxu0 %v5814_v16  ;;  %4305 = vmatprep.subr.bf16.mxu1 %v5816_v17  ;;  %v710_v43 = vunpack.c.0.s8 %v709_v38  ;;  %v5854_v47 = vld [vmem:[#allocation5 + $0x140] ss:$16 sps:$4 sm:$0xff]   ;;  %v5855_v48 = vld [vmem:[#allocation5 + $0x148] ss:$16 sps:$4 sm:$0xff]   ;;  %v5856_v50 = vld [vmem:[#allocation5 + $0x164] ss:$16 sps:$4 sm:$0xff]  }
  0x5b   :  { %v5858_v51 = vld [vmem:[#allocation5 + $0x16c] ss:$16 sps:$4 sm:$0xff]   ;;  %v5860_v53 = vld [vmem:[#allocation5 + $0x160] ss:$16 sps:$4 sm:$0xff]   ;;  %v5861_v55 = vld [vmem:[#allocation5 + $0x168] ss:$16 sps:$4 sm:$0xff]  }
  0x5c   :  { %v6916_v49 = vsub.s32 %v710_v43, %v6913_v42  ;;  %v6918_v52 = vld [vmem:[#allocation2] sm:$0xff]  ;;  %v5862_v56 = vld [vmem:[#allocation5 + $0x184] ss:$16 sps:$4 sm:$0xff]   ;;  %v5867_v61 = vld [vmem:[#allocation5 + $0x188] ss:$16 sps:$4 sm:$0xff]  }
  0x5d   :  { %3896 = vmatpush1.bf16.msra.mxu0 %v5818_v18  ;;  %4306 = vmatpush1.bf16.msra.mxu1 %v5819_v19  ;;  %v5864_v57 = vld [vmem:[#allocation5 + $0x18c] ss:$16 sps:$4 sm:$0xff]   ;;  %v5866_v59 = vld [vmem:[#allocation5 + $0x180] ss:$16 sps:$4 sm:$0xff]   ;;  %v5868_v62 = vld [vmem:[#allocation5 + $0x1a4] ss:$16 sps:$4 sm:$0xff]  }
  0x5e   :  { %3897 = vmatprep.subr.bf16.mxu0 %v5820_v20  ;;  %4307 = vmatprep.subr.bf16.mxu1 %v5822_v21  ;;  %v714_v54 = vrot.slane %v6918_v52, %v6916_v49  ;;  %v5870_v63 = vld [vmem:[#allocation5 + $0x1ac] ss:$16 sps:$4 sm:$0xff]   ;;  %v5872_v0 = vld [vmem:[#allocation5 + $0x1a0] ss:$16 sps:$4 sm:$0xff]   ;;  %v5873_v1 = vld [vmem:[#allocation5 + $0x1a8] ss:$16 sps:$4 sm:$0xff]  }
  0x5f   :  { %v5874_v2 = vld [vmem:[#allocation5 + $0x1c4] ss:$16 sps:$4 sm:$0xff]   ;;  %v5876_v3 = vld [vmem:[#allocation5 + $0x1cc] ss:$16 sps:$4 sm:$0xff]   ;;  %v5878_v4 = vld [vmem:[#allocation5 + $0x1c0] ss:$16 sps:$4 sm:$0xff]  }
  0x60   :  { %v722_v58 = vcombine.high %v714_v54, %v714_v54  ;;  %v5879_v5 = vld [vmem:[#allocation5 + $0x1c8] ss:$16 sps:$4 sm:$0xff]   ;;  %v5880_v6 = vld [vmem:[#allocation5 + $0x1e4] ss:$16 sps:$4 sm:$0xff]   ;;  %v5882_v7 = vld [vmem:[#allocation5 + $0x1ec] ss:$16 sps:$4 sm:$0xff]   ;;  %v6924_v13 = vrot.slane %v714_v54, %v6916_v49 }
  0x61   :  { %3898 = vmatpush1.bf16.msra.mxu0 %v5824_v22  ;;  %4308 = vmatpush1.bf16.msra.mxu1 %v5825_v23  ;;  %v5884_v8 = vld [vmem:[#allocation5 + $0x1e0] ss:$16 sps:$4 sm:$0xff]   ;;  %v5885_v9 = vld [vmem:[#allocation5 + $0x1e8] ss:$16 sps:$4 sm:$0xff]   ;;  %v5888_v10 = vld [vmem:[#allocation5 + $0x204] ss:$16 sps:$4 sm:$0xff]  }
  0x62   :  { %3899 = vmatprep.subr.bf16.mxu0 %v5826_v24  ;;  %4309 = vmatprep.subr.bf16.mxu1 %v5828_v25  ;;  %v744_v60 = vrot.slane %v722_v58, %v6916_v49  ;;  %v5891_v11 = vld [vmem:[#allocation5 + $0x20c] ss:$16 sps:$4 sm:$0xff]   ;;  %v5886_v12 = vld [vmem:[#allocation5 + $0x200] ss:$16 sps:$4 sm:$0xff]   ;;  %v5889_v14 = vld [vmem:[#allocation5 + $0x208] ss:$16 sps:$4 sm:$0xff]  }
  0x63   :  { %v5894_v15 = vld [vmem:[#allocation5 + $0x224] ss:$16 sps:$4 sm:$0xff]   ;;  %v5897_v16 = vld [vmem:[#allocation5 + $0x22c] ss:$16 sps:$4 sm:$0xff]   ;;  %v5892_v18 = vld [vmem:[#allocation5 + $0x220] ss:$16 sps:$4 sm:$0xff]  }
  0x64   :  { %3919 = vmatprep.mubr.bf16.mxu0 %v744_v60  ;;  %4329 = vmatprep.mubr.bf16.mxu1 %v744_v60  ;;  %v754_v17 = vcombine.high %v744_v60, %v744_v60  ;;  %v5895_v19 = vld [vmem:[#allocation5 + $0x228] ss:$16 sps:$4 sm:$0xff]   ;;  %v5900_v20 = vld [vmem:[#allocation5 + $0x244] ss:$16 sps:$4 sm:$0xff]   ;;  %v5903_v21 = vld [vmem:[#allocation5 + $0x24c] ss:$16 sps:$4 sm:$0xff]  }
  0x65   :  { %3900 = vmatpush1.bf16.msra.mxu0 %v5830_v26  ;;  %4310 = vmatpush1.bf16.msra.mxu1 %v5831_v27  ;;  %v5898_v22 = vld [vmem:[#allocation5 + $0x240] ss:$16 sps:$4 sm:$0xff]   ;;  %v5901_v23 = vld [vmem:[#allocation5 + $0x248] ss:$16 sps:$4 sm:$0xff]   ;;  %v5906_v24 = vld [vmem:[#allocation5 + $0x264] ss:$16 sps:$4 sm:$0xff]  }
  0x66   :  { %3901 = vmatprep.subr.bf16.mxu0 %v5832_v28  ;;  %4311 = vmatprep.subr.bf16.mxu1 %v5834_v29  ;;  %v5909_v25 = vld [vmem:[#allocation5 + $0x26c] ss:$16 sps:$4 sm:$0xff]   ;;  %v5904_v26 = vld [vmem:[#allocation5 + $0x260] ss:$16 sps:$4 sm:$0xff]   ;;  %v5907_v27 = vld [vmem:[#allocation5 + $0x268] ss:$16 sps:$4 sm:$0xff]  }
  0x67   :  { %v5912_v28 = vld [vmem:[#allocation5 + $0x284] ss:$16 sps:$4 sm:$0xff]   ;;  %v5915_v29 = vld [vmem:[#allocation5 + $0x28c] ss:$16 sps:$4 sm:$0xff]   ;;  %v5922_v38 = vld [vmem:[#allocation5 + $0x2c0] ss:$16 sps:$4 sm:$0xff]  }
  0x68   :  { %v5924_v36 = vld [vmem:[#allocation5 + $0x2c4] ss:$16 sps:$4 sm:$0xff]   ;;  %v5927_v37 = vld [vmem:[#allocation5 + $0x2cc] ss:$16 sps:$4 sm:$0xff]   ;;  %v5928_v43 = vld [vmem:[#allocation5 + $0x2e0] ss:$16 sps:$4 sm:$0xff]  }
  0x69   :  { %3902 = vmatpush1.bf16.msra.mxu0 %v5836_v30  ;;  %4312 = vmatpush1.bf16.msra.mxu1 %v5837_v31  ;;  %v5910_v30 = vld [vmem:[#allocation5 + $0x280] ss:$16 sps:$4 sm:$0xff]   ;;  %v5913_v31 = vld [vmem:[#allocation5 + $0x288] ss:$16 sps:$4 sm:$0xff]   ;;  %v5957_v60 = vld [vmem:[#allocation5 + $0x36c] ss:$16 sps:$4 sm:$0xff]  }
  0x6a   :  { %3903 = vmatprep.subr.bf16.mxu0 %v5838_v32  ;;  %4313 = vmatprep.subr.bf16.mxu1 %v5840_v33  ;;  %v5918_v32 = vld [vmem:[#allocation5 + $0x2a4] ss:$16 sps:$4 sm:$0xff]   ;;  %v5921_v33 = vld [vmem:[#allocation5 + $0x2ac] ss:$16 sps:$4 sm:$0xff]   ;;  %v5943_v54 = vld [vmem:[#allocation5 + $0x328] ss:$16 sps:$4 sm:$0xff]  }
  0x6b   :  { %v5949_v58 = vld [vmem:[#allocation5 + $0x348] ss:$16 sps:$4 sm:$0xff]  }
  0x6d   :  { %3904 = vmatpush1.bf16.msra.mxu0 %v5842_v34  ;;  %4314 = vmatpush1.bf16.msra.mxu1 %v5843_v35  ;;  %v5916_v34 = vld [vmem:[#allocation5 + $0x2a0] ss:$16 sps:$4 sm:$0xff]   ;;  %v5919_v35 = vld [vmem:[#allocation5 + $0x2a8] ss:$16 sps:$4 sm:$0xff]  }
  0x6e   :  { %3905 = vmatprep.subr.bf16.mxu0 %v5844_v39  ;;  %4315 = vmatprep.subr.bf16.mxu1 %v5846_v40  ;;  %v5925_v39 = vld [vmem:[#allocation5 + $0x2c8] ss:$16 sps:$4 sm:$0xff]   ;;  %v5930_v40 = vld [vmem:[#allocation5 + $0x2e4] ss:$16 sps:$4 sm:$0xff]  }
  0x71   :  { %3906 = vmatpush1.bf16.msra.mxu0 %v5848_v41  ;;  %4316 = vmatpush1.bf16.msra.mxu1 %v5849_v44  ;;  %v5933_v41 = vld [vmem:[#allocation5 + $0x2ec] ss:$16 sps:$4 sm:$0xff]   ;;  %v5931_v44 = vld [vmem:[#allocation5 + $0x2e8] ss:$16 sps:$4 sm:$0xff]  }
  0x72   :  { %3907 = vmatprep.subr.bf16.mxu0 %v5850_v45  ;;  %4317 = vmatprep.subr.bf16.mxu1 %v5852_v46  ;;  %v5936_v45 = vld [vmem:[#allocation5 + $0x304] ss:$16 sps:$4 sm:$0xff]   ;;  %v5939_v46 = vld [vmem:[#allocation5 + $0x30c] ss:$16 sps:$4 sm:$0xff]  }
  0x75   :  { %3908 = vmatpush1.bf16.msra.mxu0 %v5854_v47  ;;  %4318 = vmatpush1.bf16.msra.mxu1 %v5855_v48  ;;  %v5934_v47 = vld [vmem:[#allocation5 + $0x300] ss:$16 sps:$4 sm:$0xff]   ;;  %v5937_v48 = vld [vmem:[#allocation5 + $0x308] ss:$16 sps:$4 sm:$0xff]  }
  0x76   :  { %3909 = vmatprep.subr.bf16.mxu0 %v5856_v50  ;;  %4319 = vmatprep.subr.bf16.mxu1 %v5858_v51  ;;  %v5942_v50 = vld [vmem:[#allocation5 + $0x324] ss:$16 sps:$4 sm:$0xff]   ;;  %v5945_v51 = vld [vmem:[#allocation5 + $0x32c] ss:$16 sps:$4 sm:$0xff]  }
  0x79   :  { %3910 = vmatpush1.bf16.msra.mxu0 %v5860_v53  ;;  %4320 = vmatpush1.bf16.msra.mxu1 %v5861_v55  ;;  %v5940_v53 = vld [vmem:[#allocation5 + $0x320] ss:$16 sps:$4 sm:$0xff]   ;;  %v5948_v55 = vld [vmem:[#allocation5 + $0x344] ss:$16 sps:$4 sm:$0xff]  }
  0x7a   :  { %3911 = vmatprep.subr.bf16.mxu0 %v5862_v56  ;;  %4321 = vmatprep.subr.bf16.mxu1 %v5864_v57  ;;  %v5951_v56 = vld [vmem:[#allocation5 + $0x34c] ss:$16 sps:$4 sm:$0xff]   ;;  %v5946_v57 = vld [vmem:[#allocation5 + $0x340] ss:$16 sps:$4 sm:$0xff]  }
  0x7d   :  { %3912 = vmatpush1.bf16.msra.mxu0 %v5866_v59  ;;  %4322 = vmatpush1.bf16.msra.mxu1 %v5867_v61  ;;  %v5954_v59 = vld [vmem:[#allocation5 + $0x364] ss:$16 sps:$4 sm:$0xff]   ;;  %v5952_v61 = vld [vmem:[#allocation5 + $0x360] ss:$16 sps:$4 sm:$0xff]  }
  0x7e   :  { %3913 = vmatprep.subr.bf16.mxu0 %v5868_v62  ;;  %4323 = vmatprep.subr.bf16.mxu1 %v5870_v63  ;;  %v5955_v62 = vld [vmem:[#allocation5 + $0x368] ss:$16 sps:$4 sm:$0xff]   ;;  %v5960_v63 = vld [vmem:[#allocation5 + $0x384] ss:$16 sps:$4 sm:$0xff]  }
  0x81   :  { %3914 = vmatpush1.bf16.msra.mxu0 %v5872_v0  ;;  %4324 = vmatpush1.bf16.msra.mxu1 %v5873_v1  ;;  %v5963_v0 = vld [vmem:[#allocation5 + $0x38c] ss:$16 sps:$4 sm:$0xff]   ;;  %v5958_v1 = vld [vmem:[#allocation5 + $0x380] ss:$16 sps:$4 sm:$0xff]  }
  0x82   :  { %3915 = vmatprep.subr.bf16.mxu0 %v5874_v2  ;;  %4325 = vmatprep.subr.bf16.mxu1 %v5876_v3  ;;  %v5961_v2 = vld [vmem:[#allocation5 + $0x388] ss:$16 sps:$4 sm:$0xff]   ;;  %v5966_v3 = vld [vmem:[#allocation5 + $0x3a4] ss:$16 sps:$4 sm:$0xff]  }
  0x85   :  { %3916 = vmatpush1.bf16.msra.mxu0 %v5878_v4  ;;  %4326 = vmatpush1.bf16.msra.mxu1 %v5879_v5  ;;  %v5969_v4 = vld [vmem:[#allocation5 + $0x3ac] ss:$16 sps:$4 sm:$0xff]   ;;  %v5964_v5 = vld [vmem:[#allocation5 + $0x3a0] ss:$16 sps:$4 sm:$0xff]  }
  0x86   :  { %3917 = vmatprep.subr.bf16.mxu0 %v5880_v6  ;;  %4327 = vmatprep.subr.bf16.mxu1 %v5882_v7  ;;  %v5967_v6 = vld [vmem:[#allocation5 + $0x3a8] ss:$16 sps:$4 sm:$0xff]   ;;  %v5972_v7 = vld [vmem:[#allocation5 + $0x3c4] ss:$16 sps:$4 sm:$0xff]  }
  0x89   :  { %3918 = vmatpush1.bf16.msra.mxu0 %v5884_v8  ;;  %4328 = vmatpush1.bf16.msra.mxu1 %v5885_v9  ;;  %v5975_v8 = vld [vmem:[#allocation5 + $0x3cc] ss:$16 sps:$4 sm:$0xff]   ;;  %v707_v9 = vcombine.high %v6918_v52, %v6918_v52 }
  0x8a   :  { %3928 = vmatprep.subr.bf16.mxu0 %v5888_v10  ;;  %4338 = vmatprep.subr.bf16.mxu1 %v5891_v11  ;;  %v5970_v10 = vld [vmem:[#allocation5 + $0x3c0] ss:$16 sps:$4 sm:$0xff]   ;;  %v5973_v11 = vld [vmem:[#allocation5 + $0x3c8] ss:$16 sps:$4 sm:$0xff]  }
  0x8c   :  { %3920 = vmatmul.mubr.bf16.vlgmr.msra.gmra.mrb[0].mxu0 %v6924_v13  ;;  %4330 = vmatmul.mubr.bf16.vlgmr.msra.gmra.mrb[0].mxu1 %v6924_v13 }
  0x8d   :  { %3929 = vmatpush1.bf16.msra.mxu0 %v5886_v12  ;;  %4339 = vmatpush1.bf16.msra.mxu1 %v5889_v14  ;;  %v5978_v12 = vld [vmem:[#allocation5 + $0x3e4] ss:$16 sps:$4 sm:$0xff]   ;;  %v5981_v14 = vld [vmem:[#allocation5 + $0x3ec] ss:$16 sps:$4 sm:$0xff]  }
  0x8e   :  { %3930 = vmatprep.subr.bf16.mxu0 %v5894_v15  ;;  %4340 = vmatprep.subr.bf16.mxu1 %v5897_v16  ;;  %v6931_v15 = vrot.slane %v707_v9, %v6916_v49  ;;  %v5976_v16 = vld [vmem:[#allocation5 + $0x3e0] ss:$16 sps:$4 sm:$0xff]   ;;  %v6057_v9 = vld [vmem:[#allocation5 + $0x588] ss:$16 sps:$4 sm:$0xff]  }
  0x8f   :  { %3960 = vmatprep.mubr.bf16.mxu0 %v754_v17  ;;  %4370 = vmatprep.mubr.bf16.mxu1 %v754_v17  ;;  %v5979_v17 = vld [vmem:[#allocation5 + $0x3e8] ss:$16 sps:$4 sm:$0xff]  }
  0x90   :  { %v723_v52 = vcombine.high %v6931_v15, %v6931_v15 }
  0x91   :  { %3931 = vmatpush1.bf16.msra.mxu0 %v5892_v18  ;;  %4341 = vmatpush1.bf16.msra.mxu1 %v5895_v19  ;;  %v5984_v18 = vld [vmem:[#allocation5 + $0x404] ss:$16 sps:$4 sm:$0xff]   ;;  %v5987_v19 = vld [vmem:[#allocation5 + $0x40c] ss:$16 sps:$4 sm:$0xff]  }
  0x92   :  { %3932 = vmatprep.subr.bf16.mxu0 %v5900_v20  ;;  %4342 = vmatprep.subr.bf16.mxu1 %v5903_v21  ;;  %v5982_v20 = vld [vmem:[#allocation5 + $0x400] ss:$16 sps:$4 sm:$0xff]   ;;  %v752_v21 = vcombine.high %v6924_v13, %v6924_v13  ;;  %v5999_v13 = vld [vmem:[#allocation5 + $0x44c] ss:$16 sps:$4 sm:$0xff]  }
  0x95   :  { %3933 = vmatpush1.bf16.msra.mxu0 %v5898_v22  ;;  %4343 = vmatpush1.bf16.msra.mxu1 %v5901_v23  ;;  %v5985_v22 = vld [vmem:[#allocation5 + $0x408] ss:$16 sps:$4 sm:$0xff]   ;;  %v5990_v23 = vld [vmem:[#allocation5 + $0x424] ss:$16 sps:$4 sm:$0xff]  }
  0x96   :  { %3934 = vmatprep.subr.bf16.mxu0 %v5906_v24  ;;  %4344 = vmatprep.subr.bf16.mxu1 %v5909_v25  ;;  %v5993_v24 = vld [vmem:[#allocation5 + $0x42c] ss:$16 sps:$4 sm:$0xff]   ;;  %v6938_v25 = vrot.slane %v723_v52, %v6916_v49  ;;  %v6074_v52 = vld [vmem:[#allocation5 + $0x5e4] ss:$16 sps:$4 sm:$0xff]  }
  0x99   :  { %3935 = vmatpush1.bf16.msra.mxu0 %v5904_v26  ;;  %4345 = vmatpush1.bf16.msra.mxu1 %v5907_v27  ;;  %v5988_v26 = vld [vmem:[#allocation5 + $0x420] ss:$16 sps:$4 sm:$0xff]   ;;  %v5991_v27 = vld [vmem:[#allocation5 + $0x428] ss:$16 sps:$4 sm:$0xff]  }
  0x9a   :  { %3936 = vmatprep.subr.bf16.mxu0 %v5912_v28  ;;  %4346 = vmatprep.subr.bf16.mxu1 %v5915_v29  ;;  %v5996_v28 = vld [vmem:[#allocation5 + $0x444] ss:$16 sps:$4 sm:$0xff]   ;;  %v5994_v29 = vld [vmem:[#allocation5 + $0x440] ss:$16 sps:$4 sm:$0xff]  }
  0x9d   :  { %3937 = vmatpush1.bf16.msra.mxu0 %v5910_v30  ;;  %4347 = vmatpush1.bf16.msra.mxu1 %v5913_v31  ;;  %v5997_v30 = vld [vmem:[#allocation5 + $0x448] ss:$16 sps:$4 sm:$0xff]   ;;  %v6002_v31 = vld [vmem:[#allocation5 + $0x464] ss:$16 sps:$4 sm:$0xff]  }
  0x9e   :  { %3938 = vmatprep.subr.bf16.mxu0 %v5918_v32  ;;  %4348 = vmatprep.subr.bf16.mxu1 %v5921_v33  ;;  %v6005_v32 = vld [vmem:[#allocation5 + $0x46c] ss:$16 sps:$4 sm:$0xff]   ;;  %v6000_v33 = vld [vmem:[#allocation5 + $0x460] ss:$16 sps:$4 sm:$0xff]  }
  0xa1   :  { %3939 = vmatpush1.bf16.msra.mxu0 %v5916_v34  ;;  %4349 = vmatpush1.bf16.msra.mxu1 %v5919_v35  ;;  %v6003_v34 = vld [vmem:[#allocation5 + $0x468] ss:$16 sps:$4 sm:$0xff]   ;;  %v6008_v35 = vld [vmem:[#allocation5 + $0x484] ss:$16 sps:$4 sm:$0xff]  }
  0xa2   :  { %3940 = vmatprep.subr.bf16.mxu0 %v5924_v36  ;;  %4350 = vmatprep.subr.bf16.mxu1 %v5927_v37  ;;  %v6011_v36 = vld [vmem:[#allocation5 + $0x48c] ss:$16 sps:$4 sm:$0xff]   ;;  %v6006_v37 = vld [vmem:[#allocation5 + $0x480] ss:$16 sps:$4 sm:$0xff]  }
  0xa5   :  { %3941 = vmatpush1.bf16.msra.mxu0 %v5922_v38  ;;  %4351 = vmatpush1.bf16.msra.mxu1 %v5925_v39  ;;  %v6009_v38 = vld [vmem:[#allocation5 + $0x488] ss:$16 sps:$4 sm:$0xff]   ;;  %v6014_v39 = vld [vmem:[#allocation5 + $0x4a4] ss:$16 sps:$4 sm:$0xff]  }
  0xa6   :  { %3942 = vmatprep.subr.bf16.mxu0 %v5930_v40  ;;  %4352 = vmatprep.subr.bf16.mxu1 %v5933_v41  ;;  %v6017_v40 = vld [vmem:[#allocation5 + $0x4ac] ss:$16 sps:$4 sm:$0xff]   ;;  %v6012_v41 = vld [vmem:[#allocation5 + $0x4a0] ss:$16 sps:$4 sm:$0xff]  }
  0xa9   :  { %3943 = vmatpush1.bf16.msra.mxu0 %v5928_v43  ;;  %4353 = vmatpush1.bf16.msra.mxu1 %v5931_v44  ;;  %v6015_v43 = vld [vmem:[#allocation5 + $0x4a8] ss:$16 sps:$4 sm:$0xff]   ;;  %v6020_v44 = vld [vmem:[#allocation5 + $0x4c4] ss:$16 sps:$4 sm:$0xff]  }
  0xaa   :  { %3944 = vmatprep.subr.bf16.mxu0 %v5936_v45  ;;  %4354 = vmatprep.subr.bf16.mxu1 %v5939_v46  ;;  %v6023_v45 = vld [vmem:[#allocation5 + $0x4cc] ss:$16 sps:$4 sm:$0xff]   ;;  %v6018_v46 = vld [vmem:[#allocation5 + $0x4c0] ss:$16 sps:$4 sm:$0xff]  }
  0xad   :  { %3945 = vmatpush1.bf16.msra.mxu0 %v5934_v47  ;;  %4355 = vmatpush1.bf16.msra.mxu1 %v5937_v48  ;;  %v6021_v47 = vld [vmem:[#allocation5 + $0x4c8] ss:$16 sps:$4 sm:$0xff]   ;;  %v6026_v48 = vld [vmem:[#allocation5 + $0x4e4] ss:$16 sps:$4 sm:$0xff]  }
  0xae   :  { %3946 = vmatprep.subr.bf16.mxu0 %v5942_v50  ;;  %4356 = vmatprep.subr.bf16.mxu1 %v5945_v51  ;;  %v6029_v50 = vld [vmem:[#allocation5 + $0x4ec] ss:$16 sps:$4 sm:$0xff]   ;;  %v6024_v51 = vld [vmem:[#allocation5 + $0x4e0] ss:$16 sps:$4 sm:$0xff]  }
  0xb1   :  { %3947 = vmatpush1.bf16.msra.mxu0 %v5940_v53  ;;  %4357 = vmatpush1.bf16.msra.mxu1 %v5943_v54  ;;  %v6027_v53 = vld [vmem:[#allocation5 + $0x4e8] ss:$16 sps:$4 sm:$0xff]   ;;  %v6032_v54 = vld [vmem:[#allocation5 + $0x504] ss:$16 sps:$4 sm:$0xff]  }
  0xb2   :  { %3948 = vmatprep.subr.bf16.mxu0 %v5948_v55  ;;  %4358 = vmatprep.subr.bf16.mxu1 %v5951_v56  ;;  %v6035_v55 = vld [vmem:[#allocation5 + $0x50c] ss:$16 sps:$4 sm:$0xff]   ;;  %v6030_v56 = vld [vmem:[#allocation5 + $0x500] ss:$16 sps:$4 sm:$0xff]  }
  0xb5   :  { %3949 = vmatpush1.bf16.msra.mxu0 %v5946_v57  ;;  %4359 = vmatpush1.bf16.msra.mxu1 %v5949_v58  ;;  %v6033_v57 = vld [vmem:[#allocation5 + $0x508] ss:$16 sps:$4 sm:$0xff]   ;;  %v6038_v58 = vld [vmem:[#allocation5 + $0x524] ss:$16 sps:$4 sm:$0xff]  }
  0xb6   :  { %3950 = vmatprep.subr.bf16.mxu0 %v5954_v59  ;;  %4360 = vmatprep.subr.bf16.mxu1 %v5957_v60  ;;  %v6041_v59 = vld [vmem:[#allocation5 + $0x52c] ss:$16 sps:$4 sm:$0xff]   ;;  %v6036_v60 = vld [vmem:[#allocation5 + $0x520] ss:$16 sps:$4 sm:$0xff]  }
  0xb9   :  { %3951 = vmatpush1.bf16.msra.mxu0 %v5952_v61  ;;  %4361 = vmatpush1.bf16.msra.mxu1 %v5955_v62  ;;  %v6039_v61 = vld [vmem:[#allocation5 + $0x528] ss:$16 sps:$4 sm:$0xff]   ;;  %v6044_v62 = vld [vmem:[#allocation5 + $0x544] ss:$16 sps:$4 sm:$0xff]  }
  0xba   :  { %3952 = vmatprep.subr.bf16.mxu0 %v5960_v63  ;;  %4362 = vmatprep.subr.bf16.mxu1 %v5963_v0  ;;  %v6047_v63 = vld [vmem:[#allocation5 + $0x54c] ss:$16 sps:$4 sm:$0xff]   ;;  %v6042_v0 = vld [vmem:[#allocation5 + $0x540] ss:$16 sps:$4 sm:$0xff]  }
  0xbd   :  { %3953 = vmatpush1.bf16.msra.mxu0 %v5958_v1  ;;  %4363 = vmatpush1.bf16.msra.mxu1 %v5961_v2  ;;  %v6045_v1 = vld [vmem:[#allocation5 + $0x548] ss:$16 sps:$4 sm:$0xff]   ;;  %v6050_v2 = vld [vmem:[#allocation5 + $0x564] ss:$16 sps:$4 sm:$0xff]  }
  0xbe   :  { %3954 = vmatprep.subr.bf16.mxu0 %v5966_v3  ;;  %4364 = vmatprep.subr.bf16.mxu1 %v5969_v4  ;;  %v6053_v3 = vld [vmem:[#allocation5 + $0x56c] ss:$16 sps:$4 sm:$0xff]   ;;  %v6048_v4 = vld [vmem:[#allocation5 + $0x560] ss:$16 sps:$4 sm:$0xff]  }
  0xc1   :  { %3955 = vmatpush1.bf16.msra.mxu0 %v5964_v5  ;;  %4365 = vmatpush1.bf16.msra.mxu1 %v5967_v6  ;;  %v6051_v5 = vld [vmem:[#allocation5 + $0x568] ss:$16 sps:$4 sm:$0xff]   ;;  %v6056_v6 = vld [vmem:[#allocation5 + $0x584] ss:$16 sps:$4 sm:$0xff]  }
  0xc2   :  { %3956 = vmatprep.subr.bf16.mxu0 %v5972_v7  ;;  %4366 = vmatprep.subr.bf16.mxu1 %v5975_v8  ;;  %v6059_v7 = vld [vmem:[#allocation5 + $0x58c] ss:$16 sps:$4 sm:$0xff]   ;;  %v6054_v8 = vld [vmem:[#allocation5 + $0x580] ss:$16 sps:$4 sm:$0xff]  }
  0xc5   :  { %3957 = vmatpush1.bf16.msra.mxu0 %v5970_v10  ;;  %4367 = vmatpush1.bf16.msra.mxu1 %v5973_v11  ;;  %v6062_v10 = vld [vmem:[#allocation5 + $0x5a4] ss:$16 sps:$4 sm:$0xff]   ;;  %v6065_v11 = vld [vmem:[#allocation5 + $0x5ac] ss:$16 sps:$4 sm:$0xff]  }
  0xc6   :  { %3958 = vmatprep.subr.bf16.mxu0 %v5978_v12  ;;  %4368 = vmatprep.subr.bf16.mxu1 %v5981_v14  ;;  %v6060_v12 = vld [vmem:[#allocation5 + $0x5a0] ss:$16 sps:$4 sm:$0xff]   ;;  %v6063_v14 = vld [vmem:[#allocation5 + $0x5a8] ss:$16 sps:$4 sm:$0xff]  }
  0xc9   :  { %3959 = vmatpush1.bf16.msra.mxu0 %v5976_v16  ;;  %4369 = vmatpush1.bf16.msra.mxu1 %v5979_v17  ;;  %v6068_v16 = vld [vmem:[#allocation5 + $0x5c4] ss:$16 sps:$4 sm:$0xff]   ;;  %v6071_v17 = vld [vmem:[#allocation5 + $0x5cc] ss:$16 sps:$4 sm:$0xff]  }
  0xca   :  { %3969 = vmatprep.subr.bf16.mxu0 %v5984_v18  ;;  %4379 = vmatprep.subr.bf16.mxu1 %v5987_v19  ;;  %v6066_v18 = vld [vmem:[#allocation5 + $0x5c0] ss:$16 sps:$4 sm:$0xff]   ;;  %v6069_v19 = vld [vmem:[#allocation5 + $0x5c8] ss:$16 sps:$4 sm:$0xff]  }
  0xcc   :  { %3961 = vmatmul.mubr.bf16.vlgmr.msra.gmra.mrb[0].mxu0 %v752_v21  ;;  %4371 = vmatmul.mubr.bf16.vlgmr.msra.gmra.mrb[0].mxu1 %v752_v21  ;;  %v6072_v21 = vld [vmem:[#allocation5 + $0x5e0] ss:$16 sps:$4 sm:$0xff]  }
  0xcd   :  { %3970 = vmatpush1.bf16.msra.mxu0 %v5982_v20  ;;  %4380 = vmatpush1.bf16.msra.mxu1 %v5985_v22  ;;  %v6077_v20 = vld [vmem:[#allocation5 + $0x5ec] ss:$16 sps:$4 sm:$0xff]   ;;  %v6075_v22 = vld [vmem:[#allocation5 + $0x5e8] ss:$16 sps:$4 sm:$0xff]  }
  0xce   :  { %3971 = vmatprep.subr.bf16.mxu0 %v5990_v23  ;;  %4381 = vmatprep.subr.bf16.mxu1 %v5993_v24  ;;  %v6081_v23 = vld [vmem:[#allocation5 + $0x604] ss:$16 sps:$4 sm:$0xff]   ;;  %v6084_v24 = vld [vmem:[#allocation5 + $0x60c] ss:$16 sps:$4 sm:$0xff]  }
  0xcf   :  { %4001 = vmatprep.mubr.bf16.mxu0 %v6938_v25  ;;  %4411 = vmatprep.mubr.bf16.mxu1 %v6938_v25 }
  0xd1   :  { %3972 = vmatpush1.bf16.msra.mxu0 %v5988_v26  ;;  %4382 = vmatpush1.bf16.msra.mxu1 %v5991_v27  ;;  %v6079_v26 = vld [vmem:[#allocation5 + $0x600] ss:$16 sps:$4 sm:$0xff]   ;;  %v6944_v27 = vrot.slane %v6931_v15, %v6916_v49  ;;  %v6093_v15 = vld [vmem:[#allocation5 + $0x644] ss:$16 sps:$4 sm:$0xff]  }
  0xd2   :  { %3973 = vmatprep.subr.bf16.mxu0 %v5996_v28  ;;  %4383 = vmatprep.subr.bf16.mxu1 %v5999_v13  ;;  %v6082_v28 = vld [vmem:[#allocation5 + $0x608] ss:$16 sps:$4 sm:$0xff]   ;;  %v6087_v13 = vld [vmem:[#allocation5 + $0x624] ss:$16 sps:$4 sm:$0xff]  }
  0xd5   :  { %3974 = vmatpush1.bf16.msra.mxu0 %v5994_v29  ;;  %4384 = vmatpush1.bf16.msra.mxu1 %v5997_v30  ;;  %v6090_v29 = vld [vmem:[#allocation5 + $0x62c] ss:$16 sps:$4 sm:$0xff]   ;;  %v755_v30 = vcombine.high %v6938_v25, %v6938_v25  ;;  %v6099_v25 = vld [vmem:[#allocation5 + $0x664] ss:$16 sps:$4 sm:$0xff]  }
  0xd6   :  { %3975 = vmatprep.subr.bf16.mxu0 %v6002_v31  ;;  %4385 = vmatprep.subr.bf16.mxu1 %v6005_v32  ;;  %v6085_v31 = vld [vmem:[#allocation5 + $0x620] ss:$16 sps:$4 sm:$0xff]   ;;  %v6088_v32 = vld [vmem:[#allocation5 + $0x628] ss:$16 sps:$4 sm:$0xff]  }
  0xd9   :  { %3976 = vmatpush1.bf16.msra.mxu0 %v6000_v33  ;;  %4386 = vmatpush1.bf16.msra.mxu1 %v6003_v34  ;;  %v6096_v33 = vld [vmem:[#allocation5 + $0x64c] ss:$16 sps:$4 sm:$0xff]   ;;  %v6091_v34 = vld [vmem:[#allocation5 + $0x640] ss:$16 sps:$4 sm:$0xff]  }
  0xda   :  { %3977 = vmatprep.subr.bf16.mxu0 %v6008_v35  ;;  %4387 = vmatprep.subr.bf16.mxu1 %v6011_v36  ;;  %v6094_v35 = vld [vmem:[#allocation5 + $0x648] ss:$16 sps:$4 sm:$0xff]   ;;  %v6102_v36 = vld [vmem:[#allocation5 + $0x66c] ss:$16 sps:$4 sm:$0xff]  }
  0xdd   :  { %3978 = vmatpush1.bf16.msra.mxu0 %v6006_v37  ;;  %4388 = vmatpush1.bf16.msra.mxu1 %v6009_v38  ;;  %v6097_v37 = vld [vmem:[#allocation5 + $0x660] ss:$16 sps:$4 sm:$0xff]   ;;  %v6100_v38 = vld [vmem:[#allocation5 + $0x668] ss:$16 sps:$4 sm:$0xff]  }
  0xde   :  { %3979 = vmatprep.subr.bf16.mxu0 %v6014_v39  ;;  %4389 = vmatprep.subr.bf16.mxu1 %v6017_v40  ;;  %v6105_v39 = vld [vmem:[#allocation5 + $0x684] ss:$16 sps:$4 sm:$0xff]   ;;  %v6108_v40 = vld [vmem:[#allocation5 + $0x68c] ss:$16 sps:$4 sm:$0xff]  }
  0xe1   :  { %3980 = vmatpush1.bf16.msra.mxu0 %v6012_v41  ;;  %4390 = vmatpush1.bf16.msra.mxu1 %v6015_v43  ;;  %v6103_v41 = vld [vmem:[#allocation5 + $0x680] ss:$16 sps:$4 sm:$0xff]   ;;  %v6106_v43 = vld [vmem:[#allocation5 + $0x688] ss:$16 sps:$4 sm:$0xff]  }
  0xe2   :  { %3981 = vmatprep.subr.bf16.mxu0 %v6020_v44  ;;  %4391 = vmatprep.subr.bf16.mxu1 %v6023_v45  ;;  %v6111_v44 = vld [vmem:[#allocation5 + $0x6a4] ss:$16 sps:$4 sm:$0xff]   ;;  %v6114_v45 = vld [vmem:[#allocation5 + $0x6ac] ss:$16 sps:$4 sm:$0xff]  }
  0xe5   :  { %3982 = vmatpush1.bf16.msra.mxu0 %v6018_v46  ;;  %4392 = vmatpush1.bf16.msra.mxu1 %v6021_v47  ;;  %v6109_v46 = vld [vmem:[#allocation5 + $0x6a0] ss:$16 sps:$4 sm:$0xff]   ;;  %v6112_v47 = vld [vmem:[#allocation5 + $0x6a8] ss:$16 sps:$4 sm:$0xff]  }
  0xe6   :  { %3983 = vmatprep.subr.bf16.mxu0 %v6026_v48  ;;  %4393 = vmatprep.subr.bf16.mxu1 %v6029_v50  ;;  %v6117_v48 = vld [vmem:[#allocation5 + $0x6c4] ss:$16 sps:$4 sm:$0xff]   ;;  %v6120_v50 = vld [vmem:[#allocation5 + $0x6cc] ss:$16 sps:$4 sm:$0xff]  }
  0xe9   :  { %3984 = vmatpush1.bf16.msra.mxu0 %v6024_v51  ;;  %4394 = vmatpush1.bf16.msra.mxu1 %v6027_v53  ;;  %v6115_v51 = vld [vmem:[#allocation5 + $0x6c0] ss:$16 sps:$4 sm:$0xff]   ;;  %v6118_v53 = vld [vmem:[#allocation5 + $0x6c8] ss:$16 sps:$4 sm:$0xff]  }
  0xea   :  { %3985 = vmatprep.subr.bf16.mxu0 %v6032_v54  ;;  %4395 = vmatprep.subr.bf16.mxu1 %v6035_v55  ;;  %v6123_v54 = vld [vmem:[#allocation5 + $0x6e4] ss:$16 sps:$4 sm:$0xff]   ;;  %v6126_v55 = vld [vmem:[#allocation5 + $0x6ec] ss:$16 sps:$4 sm:$0xff]  }
  0xed   :  { %3986 = vmatpush1.bf16.msra.mxu0 %v6030_v56  ;;  %4396 = vmatpush1.bf16.msra.mxu1 %v6033_v57  ;;  %v6121_v56 = vld [vmem:[#allocation5 + $0x6e0] ss:$16 sps:$4 sm:$0xff]   ;;  %v6124_v57 = vld [vmem:[#allocation5 + $0x6e8] ss:$16 sps:$4 sm:$0xff]  }
  0xee   :  { %3987 = vmatprep.subr.bf16.mxu0 %v6038_v58  ;;  %4397 = vmatprep.subr.bf16.mxu1 %v6041_v59  ;;  %v6129_v58 = vld [vmem:[#allocation5 + $0x704] ss:$16 sps:$4 sm:$0xff]   ;;  %v6132_v59 = vld [vmem:[#allocation5 + $0x70c] ss:$16 sps:$4 sm:$0xff]  }
  0xf1   :  { %3988 = vmatpush1.bf16.msra.mxu0 %v6036_v60  ;;  %4398 = vmatpush1.bf16.msra.mxu1 %v6039_v61  ;;  %v6127_v60 = vld [vmem:[#allocation5 + $0x700] ss:$16 sps:$4 sm:$0xff]   ;;  %v6130_v61 = vld [vmem:[#allocation5 + $0x708] ss:$16 sps:$4 sm:$0xff]  }
  0xf2   :  { %3989 = vmatprep.subr.bf16.mxu0 %v6044_v62  ;;  %4399 = vmatprep.subr.bf16.mxu1 %v6047_v63  ;;  %v6135_v62 = vld [vmem:[#allocation5 + $0x724] ss:$16 sps:$4 sm:$0xff]   ;;  %v6138_v63 = vld [vmem:[#allocation5 + $0x72c] ss:$16 sps:$4 sm:$0xff]  }
  0xf5   :  { %3990 = vmatpush1.bf16.msra.mxu0 %v6042_v0  ;;  %4400 = vmatpush1.bf16.msra.mxu1 %v6045_v1  ;;  %v6133_v0 = vld [vmem:[#allocation5 + $0x720] ss:$16 sps:$4 sm:$0xff]   ;;  %v6136_v1 = vld [vmem:[#allocation5 + $0x728] ss:$16 sps:$4 sm:$0xff]  }
  0xf6   :  { %3991 = vmatprep.subr.bf16.mxu0 %v6050_v2  ;;  %4401 = vmatprep.subr.bf16.mxu1 %v6053_v3  ;;  %v6141_v2 = vld [vmem:[#allocation5 + $0x744] ss:$16 sps:$4 sm:$0xff]   ;;  %v6144_v3 = vld [vmem:[#allocation5 + $0x74c] ss:$16 sps:$4 sm:$0xff]  }
  0xf9   :  { %3992 = vmatpush1.bf16.msra.mxu0 %v6048_v4  ;;  %4402 = vmatpush1.bf16.msra.mxu1 %v6051_v5  ;;  %v6139_v4 = vld [vmem:[#allocation5 + $0x740] ss:$16 sps:$4 sm:$0xff]   ;;  %v6142_v5 = vld [vmem:[#allocation5 + $0x748] ss:$16 sps:$4 sm:$0xff]  }
  0xfa   :  { %3993 = vmatprep.subr.bf16.mxu0 %v6056_v6  ;;  %4403 = vmatprep.subr.bf16.mxu1 %v6059_v7  ;;  %v6147_v6 = vld [vmem:[#allocation5 + $0x764] ss:$16 sps:$4 sm:$0xff]   ;;  %v6150_v7 = vld [vmem:[#allocation5 + $0x76c] ss:$16 sps:$4 sm:$0xff]  }
  0xfd   :  { %3994 = vmatpush1.bf16.msra.mxu0 %v6054_v8  ;;  %4404 = vmatpush1.bf16.msra.mxu1 %v6057_v9  ;;  %v6145_v8 = vld [vmem:[#allocation5 + $0x760] ss:$16 sps:$4 sm:$0xff]   ;;  %v6148_v9 = vld [vmem:[#allocation5 + $0x768] ss:$16 sps:$4 sm:$0xff]  }
  0xfe   :  { %3995 = vmatprep.subr.bf16.mxu0 %v6062_v10  ;;  %4405 = vmatprep.subr.bf16.mxu1 %v6065_v11  ;;  %v6153_v10 = vld [vmem:[#allocation5 + $0x784] ss:$16 sps:$4 sm:$0xff]   ;;  %v6156_v11 = vld [vmem:[#allocation5 + $0x78c] ss:$16 sps:$4 sm:$0xff]  }
 0x101   :  { %3996 = vmatpush1.bf16.msra.mxu0 %v6060_v12  ;;  %4406 = vmatpush1.bf16.msra.mxu1 %v6063_v14  ;;  %v6151_v12 = vld [vmem:[#allocation5 + $0x780] ss:$16 sps:$4 sm:$0xff]   ;;  %v6154_v14 = vld [vmem:[#allocation5 + $0x788] ss:$16 sps:$4 sm:$0xff]  }
 0x102   :  { %3997 = vmatprep.subr.bf16.mxu0 %v6068_v16  ;;  %4407 = vmatprep.subr.bf16.mxu1 %v6071_v17  ;;  %v6159_v16 = vld [vmem:[#allocation5 + $0x7a4] ss:$16 sps:$4 sm:$0xff]   ;;  %v6162_v17 = vld [vmem:[#allocation5 + $0x7ac] ss:$16 sps:$4 sm:$0xff]  }
 0x105   :  { %3998 = vmatpush1.bf16.msra.mxu0 %v6066_v18  ;;  %4408 = vmatpush1.bf16.msra.mxu1 %v6069_v19  ;;  %v6157_v18 = vld [vmem:[#allocation5 + $0x7a0] ss:$16 sps:$4 sm:$0xff]   ;;  %v6160_v19 = vld [vmem:[#allocation5 + $0x7a8] ss:$16 sps:$4 sm:$0xff]  }
 0x106   :  { %3999 = vmatprep.subr.bf16.mxu0 %v6074_v52  ;;  %4409 = vmatprep.subr.bf16.mxu1 %v6077_v20  ;;  %v6165_v52 = vld [vmem:[#allocation5 + $0x7c4] ss:$16 sps:$4 sm:$0xff]   ;;  %v6168_v20 = vld [vmem:[#allocation5 + $0x7cc] ss:$16 sps:$4 sm:$0xff]  }
 0x109   :  { %4000 = vmatpush1.bf16.msra.mxu0 %v6072_v21  ;;  %4410 = vmatpush1.bf16.msra.mxu1 %v6075_v22  ;;  %v6950_v21 = vld [vmem:[#allocation2 + $0x8] sm:$0xff]  ;;  %v6163_v22 = vld [vmem:[#allocation5 + $0x7c0] ss:$16 sps:$4 sm:$0xff]  }
 0x10a   :  { %4010 = vmatprep.subr.bf16.mxu0 %v6081_v23  ;;  %4420 = vmatprep.subr.bf16.mxu1 %v6084_v24  ;;  %v6166_v23 = vld [vmem:[#allocation5 + $0x7c8] ss:$16 sps:$4 sm:$0xff]   ;;  %v6171_v24 = vld [vmem:[#allocation5 + $0x7e4] ss:$16 sps:$4 sm:$0xff]  }
 0x10c   :  { %4002 = vmatmul.mubr.bf16.vlgmr.msra.gmra.mrb[0].mxu0 %v6944_v27  ;;  %4412 = vmatmul.mubr.bf16.vlgmr.msra.gmra.mrb[0].mxu1 %v6944_v27 }
 0x10d   :  { %4011 = vmatpush1.bf16.msra.mxu0 %v6079_v26  ;;  %4421 = vmatpush1.bf16.msra.mxu1 %v6082_v28  ;;  %v6174_v26 = vld [vmem:[#allocation5 + $0x7ec] ss:$16 sps:$4 sm:$0xff]   ;;  %v6954_v28 = vrot.slane %v6950_v21, %v6916_v49 }
 0x10e   :  { %4012 = vmatprep.subr.bf16.mxu0 %v6087_v13  ;;  %4422 = vmatprep.subr.bf16.mxu1 %v6090_v29  ;;  %v6169_v13 = vld [vmem:[#allocation5 + $0x7e0] ss:$16 sps:$4 sm:$0xff]   ;;  %v6172_v29 = vld [vmem:[#allocation5 + $0x7e8] ss:$16 sps:$4 sm:$0xff]  }
 0x10f   :  { %4042 = vmatprep.mubr.bf16.mxu0 %v755_v30  ;;  %4452 = vmatprep.mubr.bf16.mxu1 %v755_v30  ;;  %v6177_v30 = vld [vmem:[#allocation5 + $0x804] ss:$16 sps:$4 sm:$0xff]  }
 0x111   :  { %4013 = vmatpush1.bf16.msra.mxu0 %v6085_v31  ;;  %4423 = vmatpush1.bf16.msra.mxu1 %v6088_v32  ;;  %v6180_v31 = vld [vmem:[#allocation5 + $0x80c] ss:$16 sps:$4 sm:$0xff]   ;;  %v771_v32 = vcombine.high %v6954_v28, %v6954_v28 }
 0x112   :  { %4014 = vmatprep.subr.bf16.mxu0 %v6093_v15  ;;  %4424 = vmatprep.subr.bf16.mxu1 %v6096_v33  ;;  %v753_v15 = vcombine.high %v6944_v27, %v6944_v27  ;;  %v6175_v33 = vld [vmem:[#allocation5 + $0x800] ss:$16 sps:$4 sm:$0xff]   ;;  %v6189_v27 = vld [vmem:[#allocation5 + $0x844] ss:$16 sps:$4 sm:$0xff]  }
 0x115   :  { %4015 = vmatpush1.bf16.msra.mxu0 %v6091_v34  ;;  %4425 = vmatpush1.bf16.msra.mxu1 %v6094_v35  ;;  %v6178_v34 = vld [vmem:[#allocation5 + $0x808] ss:$16 sps:$4 sm:$0xff]   ;;  %v6183_v35 = vld [vmem:[#allocation5 + $0x824] ss:$16 sps:$4 sm:$0xff]  }
 0x116   :  { %4016 = vmatprep.subr.bf16.mxu0 %v6099_v25  ;;  %4426 = vmatprep.subr.bf16.mxu1 %v6102_v36  ;;  %v6186_v25 = vld [vmem:[#allocation5 + $0x82c] ss:$16 sps:$4 sm:$0xff]   ;;  %v6961_v36 = vrot.slane %v771_v32, %v6916_v49  ;;  %v6262_v32 = vld [vmem:[#allocation5 + $0x9c8] ss:$16 sps:$4 sm:$0xff]  }
 0x119   :  { %4017 = vmatpush1.bf16.msra.mxu0 %v6097_v37  ;;  %4427 = vmatpush1.bf16.msra.mxu1 %v6100_v38  ;;  %v6181_v37 = vld [vmem:[#allocation5 + $0x820] ss:$16 sps:$4 sm:$0xff]   ;;  %v6184_v38 = vld [vmem:[#allocation5 + $0x828] ss:$16 sps:$4 sm:$0xff]  }
 0x11a   :  { %4018 = vmatprep.subr.bf16.mxu0 %v6105_v39  ;;  %4428 = vmatprep.subr.bf16.mxu1 %v6108_v40  ;;  %v6192_v39 = vld [vmem:[#allocation5 + $0x84c] ss:$16 sps:$4 sm:$0xff]   ;;  %v6187_v40 = vld [vmem:[#allocation5 + $0x840] ss:$16 sps:$4 sm:$0xff]  }
 0x11d   :  { %4019 = vmatpush1.bf16.msra.mxu0 %v6103_v41  ;;  %4429 = vmatpush1.bf16.msra.mxu1 %v6106_v43  ;;  %v6190_v41 = vld [vmem:[#allocation5 + $0x848] ss:$16 sps:$4 sm:$0xff]   ;;  %v6195_v43 = vld [vmem:[#allocation5 + $0x864] ss:$16 sps:$4 sm:$0xff]  }
 0x11e   :  { %4020 = vmatprep.subr.bf16.mxu0 %v6111_v44  ;;  %4430 = vmatprep.subr.bf16.mxu1 %v6114_v45  ;;  %v6198_v44 = vld [vmem:[#allocation5 + $0x86c] ss:$16 sps:$4 sm:$0xff]   ;;  %v6193_v45 = vld [vmem:[#allocation5 + $0x860] ss:$16 sps:$4 sm:$0xff]  }
 0x121   :  { %4021 = vmatpush1.bf16.msra.mxu0 %v6109_v46  ;;  %4431 = vmatpush1.bf16.msra.mxu1 %v6112_v47  ;;  %v6196_v46 = vld [vmem:[#allocation5 + $0x868] ss:$16 sps:$4 sm:$0xff]   ;;  %v6201_v47 = vld [vmem:[#allocation5 + $0x884] ss:$16 sps:$4 sm:$0xff]  }
 0x122   :  { %4022 = vmatprep.subr.bf16.mxu0 %v6117_v48  ;;  %4432 = vmatprep.subr.bf16.mxu1 %v6120_v50  ;;  %v6204_v48 = vld [vmem:[#allocation5 + $0x88c] ss:$16 sps:$4 sm:$0xff]   ;;  %v6199_v50 = vld [vmem:[#allocation5 + $0x880] ss:$16 sps:$4 sm:$0xff]  }
 0x125   :  { %4023 = vmatpush1.bf16.msra.mxu0 %v6115_v51  ;;  %4433 = vmatpush1.bf16.msra.mxu1 %v6118_v53  ;;  %v6202_v51 = vld [vmem:[#allocation5 + $0x888] ss:$16 sps:$4 sm:$0xff]   ;;  %v6207_v53 = vld [vmem:[#allocation5 + $0x8a4] ss:$16 sps:$4 sm:$0xff]  }
 0x126   :  { %4024 = vmatprep.subr.bf16.mxu0 %v6123_v54  ;;  %4434 = vmatprep.subr.bf16.mxu1 %v6126_v55  ;;  %v6210_v54 = vld [vmem:[#allocation5 + $0x8ac] ss:$16 sps:$4 sm:$0xff]   ;;  %v6205_v55 = vld [vmem:[#allocation5 + $0x8a0] ss:$16 sps:$4 sm:$0xff]  }
 0x129   :  { %4025 = vmatpush1.bf16.msra.mxu0 %v6121_v56  ;;  %4435 = vmatpush1.bf16.msra.mxu1 %v6124_v57  ;;  %v6208_v56 = vld [vmem:[#allocation5 + $0x8a8] ss:$16 sps:$4 sm:$0xff]   ;;  %v6213_v57 = vld [vmem:[#allocation5 + $0x8c4] ss:$16 sps:$4 sm:$0xff]  }
 0x12a   :  { %4026 = vmatprep.subr.bf16.mxu0 %v6129_v58  ;;  %4436 = vmatprep.subr.bf16.mxu1 %v6132_v59  ;;  %v6216_v58 = vld [vmem:[#allocation5 + $0x8cc] ss:$16 sps:$4 sm:$0xff]   ;;  %v6211_v59 = vld [vmem:[#allocation5 + $0x8c0] ss:$16 sps:$4 sm:$0xff]  }
 0x12d   :  { %4027 = vmatpush1.bf16.msra.mxu0 %v6127_v60  ;;  %4437 = vmatpush1.bf16.msra.mxu1 %v6130_v61  ;;  %v6214_v60 = vld [vmem:[#allocation5 + $0x8c8] ss:$16 sps:$4 sm:$0xff]   ;;  %v6219_v61 = vld [vmem:[#allocation5 + $0x8e4] ss:$16 sps:$4 sm:$0xff]  }
 0x12e   :  { %4028 = vmatprep.subr.bf16.mxu0 %v6135_v62  ;;  %4438 = vmatprep.subr.bf16.mxu1 %v6138_v63  ;;  %v6222_v62 = vld [vmem:[#allocation5 + $0x8ec] ss:$16 sps:$4 sm:$0xff]   ;;  %v6217_v63 = vld [vmem:[#allocation5 + $0x8e0] ss:$16 sps:$4 sm:$0xff]  }
 0x131   :  { %4029 = vmatpush1.bf16.msra.mxu0 %v6133_v0  ;;  %4439 = vmatpush1.bf16.msra.mxu1 %v6136_v1  ;;  %v6220_v0 = vld [vmem:[#allocation5 + $0x8e8] ss:$16 sps:$4 sm:$0xff]   ;;  %v6225_v1 = vld [vmem:[#allocation5 + $0x904] ss:$16 sps:$4 sm:$0xff]  }
 0x132   :  { %4030 = vmatprep.subr.bf16.mxu0 %v6141_v2  ;;  %4440 = vmatprep.subr.bf16.mxu1 %v6144_v3  ;;  %v6228_v2 = vld [vmem:[#allocation5 + $0x90c] ss:$16 sps:$4 sm:$0xff]   ;;  %v6223_v3 = vld [vmem:[#allocation5 + $0x900] ss:$16 sps:$4 sm:$0xff]  }
 0x135   :  { %4031 = vmatpush1.bf16.msra.mxu0 %v6139_v4  ;;  %4441 = vmatpush1.bf16.msra.mxu1 %v6142_v5  ;;  %v6226_v4 = vld [vmem:[#allocation5 + $0x908] ss:$16 sps:$4 sm:$0xff]   ;;  %v6231_v5 = vld [vmem:[#allocation5 + $0x924] ss:$16 sps:$4 sm:$0xff]  }
 0x136   :  { %4032 = vmatprep.subr.bf16.mxu0 %v6147_v6  ;;  %4442 = vmatprep.subr.bf16.mxu1 %v6150_v7  ;;  %v6234_v6 = vld [vmem:[#allocation5 + $0x92c] ss:$16 sps:$4 sm:$0xff]   ;;  %v6229_v7 = vld [vmem:[#allocation5 + $0x920] ss:$16 sps:$4 sm:$0xff]  }
 0x139   :  { %4033 = vmatpush1.bf16.msra.mxu0 %v6145_v8  ;;  %4443 = vmatpush1.bf16.msra.mxu1 %v6148_v9  ;;  %v6232_v8 = vld [vmem:[#allocation5 + $0x928] ss:$16 sps:$4 sm:$0xff]   ;;  %v6237_v9 = vld [vmem:[#allocation5 + $0x944] ss:$16 sps:$4 sm:$0xff]  }
 0x13a   :  { %4034 = vmatprep.subr.bf16.mxu0 %v6153_v10  ;;  %4444 = vmatprep.subr.bf16.mxu1 %v6156_v11  ;;  %v6240_v10 = vld [vmem:[#allocation5 + $0x94c] ss:$16 sps:$4 sm:$0xff]   ;;  %v6235_v11 = vld [vmem:[#allocation5 + $0x940] ss:$16 sps:$4 sm:$0xff]  }
 0x13d   :  { %4035 = vmatpush1.bf16.msra.mxu0 %v6151_v12  ;;  %4445 = vmatpush1.bf16.msra.mxu1 %v6154_v14  ;;  %v6238_v12 = vld [vmem:[#allocation5 + $0x948] ss:$16 sps:$4 sm:$0xff]   ;;  %v6243_v14 = vld [vmem:[#allocation5 + $0x964] ss:$16 sps:$4 sm:$0xff]  }
 0x13e   :  { %4036 = vmatprep.subr.bf16.mxu0 %v6159_v16  ;;  %4446 = vmatprep.subr.bf16.mxu1 %v6162_v17  ;;  %v6246_v16 = vld [vmem:[#allocation5 + $0x96c] ss:$16 sps:$4 sm:$0xff]   ;;  %v6241_v17 = vld [vmem:[#allocation5 + $0x960] ss:$16 sps:$4 sm:$0xff]  }
 0x141   :  { %4037 = vmatpush1.bf16.msra.mxu0 %v6157_v18  ;;  %4447 = vmatpush1.bf16.msra.mxu1 %v6160_v19  ;;  %v6244_v18 = vld [vmem:[#allocation5 + $0x968] ss:$16 sps:$4 sm:$0xff]   ;;  %v6249_v19 = vld [vmem:[#allocation5 + $0x984] ss:$16 sps:$4 sm:$0xff]  }
 0x142   :  { %4038 = vmatprep.subr.bf16.mxu0 %v6165_v52  ;;  %4448 = vmatprep.subr.bf16.mxu1 %v6168_v20  ;;  %v6252_v52 = vld [vmem:[#allocation5 + $0x98c] ss:$16 sps:$4 sm:$0xff]   ;;  %v6247_v20 = vld [vmem:[#allocation5 + $0x980] ss:$16 sps:$4 sm:$0xff]  }
 0x145   :  { %4039 = vmatpush1.bf16.msra.mxu0 %v6163_v22  ;;  %4449 = vmatpush1.bf16.msra.mxu1 %v6166_v23  ;;  %v6250_v22 = vld [vmem:[#allocation5 + $0x988] ss:$16 sps:$4 sm:$0xff]   ;;  %v6255_v23 = vld [vmem:[#allocation5 + $0x9a4] ss:$16 sps:$4 sm:$0xff]  }
 0x146   :  { %4040 = vmatprep.subr.bf16.mxu0 %v6171_v24  ;;  %4450 = vmatprep.subr.bf16.mxu1 %v6174_v26  ;;  %v6258_v24 = vld [vmem:[#allocation5 + $0x9ac] ss:$16 sps:$4 sm:$0xff]   ;;  %v6253_v26 = vld [vmem:[#allocation5 + $0x9a0] ss:$16 sps:$4 sm:$0xff]  }
 0x149   :  { %4041 = vmatpush1.bf16.msra.mxu0 %v6169_v13  ;;  %4451 = vmatpush1.bf16.msra.mxu1 %v6172_v29  ;;  %v6256_v13 = vld [vmem:[#allocation5 + $0x9a8] ss:$16 sps:$4 sm:$0xff]   ;;  %v6261_v29 = vld [vmem:[#allocation5 + $0x9c4] ss:$16 sps:$4 sm:$0xff]  }
 0x14a   :  { %4051 = vmatprep.subr.bf16.mxu0 %v6177_v30  ;;  %4461 = vmatprep.subr.bf16.mxu1 %v6180_v31  ;;  %v6264_v30 = vld [vmem:[#allocation5 + $0x9cc] ss:$16 sps:$4 sm:$0xff]   ;;  %v6259_v31 = vld [vmem:[#allocation5 + $0x9c0] ss:$16 sps:$4 sm:$0xff]  }
 0x14c   :  { %4043 = vmatmul.mubr.bf16.vlgmr.msra.gmra.mrb[0].mxu0 %v753_v15  ;;  %4453 = vmatmul.mubr.bf16.vlgmr.msra.gmra.mrb[0].mxu1 %v753_v15  ;;  %v6267_v15 = vld [vmem:[#allocation5 + $0x9e4] ss:$16 sps:$4 sm:$0xff]  }
 0x14d   :  { %4052 = vmatpush1.bf16.msra.mxu0 %v6175_v33  ;;  %4462 = vmatpush1.bf16.msra.mxu1 %v6178_v34  ;;  %v6270_v33 = vld [vmem:[#allocation5 + $0x9ec] ss:$16 sps:$4 sm:$0xff]   ;;  %v6265_v34 = vld [vmem:[#allocation5 + $0x9e0] ss:$16 sps:$4 sm:$0xff]  }
 0x14e   :  { %4053 = vmatprep.subr.bf16.mxu0 %v6183_v35  ;;  %4463 = vmatprep.subr.bf16.mxu1 %v6186_v25  ;;  %v6268_v35 = vld [vmem:[#allocation5 + $0x9e8] ss:$16 sps:$4 sm:$0xff]   ;;  %v6273_v25 = vld [vmem:[#allocation5 + $0xa04] ss:$16 sps:$4 sm:$0xff]  }
 0x14f   :  { %4083 = vmatprep.mubr.bf16.mxu0 %v6961_v36  ;;  %4493 = vmatprep.mubr.bf16.mxu1 %v6961_v36 }
 0x151   :  { %4054 = vmatpush1.bf16.msra.mxu0 %v6181_v37  ;;  %4464 = vmatpush1.bf16.msra.mxu1 %v6184_v38  ;;  %v6276_v37 = vld [vmem:[#allocation5 + $0xa0c] ss:$16 sps:$4 sm:$0xff]   ;;  %v6967_v38 = vrot.slane %v6954_v28, %v6916_v49  ;;  %v6280_v28 = vld [vmem:[#allocation5 + $0xa28] ss:$16 sps:$4 sm:$0xff]  }
 0x152   :  { %4055 = vmatprep.subr.bf16.mxu0 %v6189_v27  ;;  %4465 = vmatprep.subr.bf16.mxu1 %v6192_v39  ;;  %v6271_v27 = vld [vmem:[#allocation5 + $0xa00] ss:$16 sps:$4 sm:$0xff]   ;;  %v6274_v39 = vld [vmem:[#allocation5 + $0xa08] ss:$16 sps:$4 sm:$0xff]  }
 0x155   :  { %4056 = vmatpush1.bf16.msra.mxu0 %v6187_v40  ;;  %4466 = vmatpush1.bf16.msra.mxu1 %v6190_v41  ;;  %v6279_v40 = vld [vmem:[#allocation5 + $0xa24] ss:$16 sps:$4 sm:$0xff]   ;;  %v6282_v41 = vld [vmem:[#allocation5 + $0xa2c] ss:$16 sps:$4 sm:$0xff]  }
 0x156   :  { %4057 = vmatprep.subr.bf16.mxu0 %v6195_v43  ;;  %4467 = vmatprep.subr.bf16.mxu1 %v6198_v44  ;;  %v803_v43 = vcombine.high %v6961_v36, %v6961_v36  ;;  %v6277_v44 = vld [vmem:[#allocation5 + $0xa20] ss:$16 sps:$4 sm:$0xff]   ;;  %v6291_v36 = vld [vmem:[#allocation5 + $0xa64] ss:$16 sps:$4 sm:$0xff]  }
 0x159   :  { %4058 = vmatpush1.bf16.msra.mxu0 %v6193_v45  ;;  %4468 = vmatpush1.bf16.msra.mxu1 %v6196_v46  ;;  %v6285_v45 = vld [vmem:[#allocation5 + $0xa44] ss:$16 sps:$4 sm:$0xff]   ;;  %v6288_v46 = vld [vmem:[#allocation5 + $0xa4c] ss:$16 sps:$4 sm:$0xff]  }
 0x15a   :  { %4059 = vmatprep.subr.bf16.mxu0 %v6201_v47  ;;  %4469 = vmatprep.subr.bf16.mxu1 %v6204_v48  ;;  %v6283_v47 = vld [vmem:[#allocation5 + $0xa40] ss:$16 sps:$4 sm:$0xff]   ;;  %v6286_v48 = vld [vmem:[#allocation5 + $0xa48] ss:$16 sps:$4 sm:$0xff]  }
 0x15d   :  { %4060 = vmatpush1.bf16.msra.mxu0 %v6199_v50  ;;  %4470 = vmatpush1.bf16.msra.mxu1 %v6202_v51  ;;  %v6294_v50 = vld [vmem:[#allocation5 + $0xa6c] ss:$16 sps:$4 sm:$0xff]   ;;  %v6289_v51 = vld [vmem:[#allocation5 + $0xa60] ss:$16 sps:$4 sm:$0xff]  }
 0x15e   :  { %4061 = vmatprep.subr.bf16.mxu0 %v6207_v53  ;;  %4471 = vmatprep.subr.bf16.mxu1 %v6210_v54  ;;  %v6292_v53 = vld [vmem:[#allocation5 + $0xa68] ss:$16 sps:$4 sm:$0xff]   ;;  %v6297_v54 = vld [vmem:[#allocation5 + $0xa84] ss:$16 sps:$4 sm:$0xff]  }
 0x161   :  { %4062 = vmatpush1.bf16.msra.mxu0 %v6205_v55  ;;  %4472 = vmatpush1.bf16.msra.mxu1 %v6208_v56  ;;  %v6300_v55 = vld [vmem:[#allocation5 + $0xa8c] ss:$16 sps:$4 sm:$0xff]   ;;  %v6295_v56 = vld [vmem:[#allocation5 + $0xa80] ss:$16 sps:$4 sm:$0xff]  }
 0x162   :  { %4063 = vmatprep.subr.bf16.mxu0 %v6213_v57  ;;  %4473 = vmatprep.subr.bf16.mxu1 %v6216_v58  ;;  %v6298_v57 = vld [vmem:[#allocation5 + $0xa88] ss:$16 sps:$4 sm:$0xff]   ;;  %v6303_v58 = vld [vmem:[#allocation5 + $0xaa4] ss:$16 sps:$4 sm:$0xff]  }
 0x165   :  { %4064 = vmatpush1.bf16.msra.mxu0 %v6211_v59  ;;  %4474 = vmatpush1.bf16.msra.mxu1 %v6214_v60  ;;  %v6306_v59 = vld [vmem:[#allocation5 + $0xaac] ss:$16 sps:$4 sm:$0xff]   ;;  %v6301_v60 = vld [vmem:[#allocation5 + $0xaa0] ss:$16 sps:$4 sm:$0xff]  }
 0x166   :  { %4065 = vmatprep.subr.bf16.mxu0 %v6219_v61  ;;  %4475 = vmatprep.subr.bf16.mxu1 %v6222_v62  ;;  %v6304_v61 = vld [vmem:[#allocation5 + $0xaa8] ss:$16 sps:$4 sm:$0xff]   ;;  %v6309_v62 = vld [vmem:[#allocation5 + $0xac4] ss:$16 sps:$4 sm:$0xff]  }
 0x169   :  { %4066 = vmatpush1.bf16.msra.mxu0 %v6217_v63  ;;  %4476 = vmatpush1.bf16.msra.mxu1 %v6220_v0  ;;  %v6312_v63 = vld [vmem:[#allocation5 + $0xacc] ss:$16 sps:$4 sm:$0xff]   ;;  %v6307_v0 = vld [vmem:[#allocation5 + $0xac0] ss:$16 sps:$4 sm:$0xff]  }
 0x16a   :  { %4067 = vmatprep.subr.bf16.mxu0 %v6225_v1  ;;  %4477 = vmatprep.subr.bf16.mxu1 %v6228_v2  ;;  %v6310_v1 = vld [vmem:[#allocation5 + $0xac8] ss:$16 sps:$4 sm:$0xff]   ;;  %v6315_v2 = vld [vmem:[#allocation5 + $0xae4] ss:$16 sps:$4 sm:$0xff]  }
 0x16d   :  { %4068 = vmatpush1.bf16.msra.mxu0 %v6223_v3  ;;  %4478 = vmatpush1.bf16.msra.mxu1 %v6226_v4  ;;  %v6318_v3 = vld [vmem:[#allocation5 + $0xaec] ss:$16 sps:$4 sm:$0xff]   ;;  %v6313_v4 = vld [vmem:[#allocation5 + $0xae0] ss:$16 sps:$4 sm:$0xff]  }
 0x16e   :  { %4069 = vmatprep.subr.bf16.mxu0 %v6231_v5  ;;  %4479 = vmatprep.subr.bf16.mxu1 %v6234_v6  ;;  %v6316_v5 = vld [vmem:[#allocation5 + $0xae8] ss:$16 sps:$4 sm:$0xff]   ;;  %v6321_v6 = vld [vmem:[#allocation5 + $0xb04] ss:$16 sps:$4 sm:$0xff]  }
 0x171   :  { %4070 = vmatpush1.bf16.msra.mxu0 %v6229_v7  ;;  %4480 = vmatpush1.bf16.msra.mxu1 %v6232_v8  ;;  %v6324_v7 = vld [vmem:[#allocation5 + $0xb0c] ss:$16 sps:$4 sm:$0xff]   ;;  %v6319_v8 = vld [vmem:[#allocation5 + $0xb00] ss:$16 sps:$4 sm:$0xff]  }
 0x172   :  { %4071 = vmatprep.subr.bf16.mxu0 %v6237_v9  ;;  %4481 = vmatprep.subr.bf16.mxu1 %v6240_v10  ;;  %v6322_v9 = vld [vmem:[#allocation5 + $0xb08] ss:$16 sps:$4 sm:$0xff]   ;;  %v6327_v10 = vld [vmem:[#allocation5 + $0xb24] ss:$16 sps:$4 sm:$0xff]  }
 0x175   :  { %4072 = vmatpush1.bf16.msra.mxu0 %v6235_v11  ;;  %4482 = vmatpush1.bf16.msra.mxu1 %v6238_v12  ;;  %v6330_v11 = vld [vmem:[#allocation5 + $0xb2c] ss:$16 sps:$4 sm:$0xff]   ;;  %v6325_v12 = vld [vmem:[#allocation5 + $0xb20] ss:$16 sps:$4 sm:$0xff]  }
 0x176   :  { %4073 = vmatprep.subr.bf16.mxu0 %v6243_v14  ;;  %4483 = vmatprep.subr.bf16.mxu1 %v6246_v16  ;;  %v6328_v14 = vld [vmem:[#allocation5 + $0xb28] ss:$16 sps:$4 sm:$0xff]   ;;  %v6333_v16 = vld [vmem:[#allocation5 + $0xb44] ss:$16 sps:$4 sm:$0xff]  }
 0x179   :  { %4074 = vmatpush1.bf16.msra.mxu0 %v6241_v17  ;;  %4484 = vmatpush1.bf16.msra.mxu1 %v6244_v18  ;;  %v6336_v17 = vld [vmem:[#allocation5 + $0xb4c] ss:$16 sps:$4 sm:$0xff]   ;;  %v6331_v18 = vld [vmem:[#allocation5 + $0xb40] ss:$16 sps:$4 sm:$0xff]  }
 0x17a   :  { %4075 = vmatprep.subr.bf16.mxu0 %v6249_v19  ;;  %4485 = vmatprep.subr.bf16.mxu1 %v6252_v52  ;;  %v6334_v19 = vld [vmem:[#allocation5 + $0xb48] ss:$16 sps:$4 sm:$0xff]   ;;  %v6339_v52 = vld [vmem:[#allocation5 + $0xb64] ss:$16 sps:$4 sm:$0xff]  }
 0x17d   :  { %4076 = vmatpush1.bf16.msra.mxu0 %v6247_v20  ;;  %4486 = vmatpush1.bf16.msra.mxu1 %v6250_v22  ;;  %v6342_v20 = vld [vmem:[#allocation5 + $0xb6c] ss:$16 sps:$4 sm:$0xff]   ;;  %v6337_v22 = vld [vmem:[#allocation5 + $0xb60] ss:$16 sps:$4 sm:$0xff]  }
 0x17e   :  { %4077 = vmatprep.subr.bf16.mxu0 %v6255_v23  ;;  %4487 = vmatprep.subr.bf16.mxu1 %v6258_v24  ;;  %v6340_v23 = vld [vmem:[#allocation5 + $0xb68] ss:$16 sps:$4 sm:$0xff]   ;;  %v6345_v24 = vld [vmem:[#allocation5 + $0xb84] ss:$16 sps:$4 sm:$0xff]  }
 0x181   :  { %4078 = vmatpush1.bf16.msra.mxu0 %v6253_v26  ;;  %4488 = vmatpush1.bf16.msra.mxu1 %v6256_v13  ;;  %v6348_v26 = vld [vmem:[#allocation5 + $0xb8c] ss:$16 sps:$4 sm:$0xff]   ;;  %v6343_v13 = vld [vmem:[#allocation5 + $0xb80] ss:$16 sps:$4 sm:$0xff]  }
 0x182   :  { %4079 = vmatprep.subr.bf16.mxu0 %v6261_v29  ;;  %4489 = vmatprep.subr.bf16.mxu1 %v6264_v30  ;;  %v6346_v29 = vld [vmem:[#allocation5 + $0xb88] ss:$16 sps:$4 sm:$0xff]   ;;  %v6351_v30 = vld [vmem:[#allocation5 + $0xba4] ss:$16 sps:$4 sm:$0xff]  }
 0x185   :  { %4080 = vmatpush1.bf16.msra.mxu0 %v6259_v31  ;;  %4490 = vmatpush1.bf16.msra.mxu1 %v6262_v32  ;;  %v6354_v31 = vld [vmem:[#allocation5 + $0xbac] ss:$16 sps:$4 sm:$0xff]   ;;  %v6349_v32 = vld [vmem:[#allocation5 + $0xba0] ss:$16 sps:$4 sm:$0xff]  }
 0x186   :  { %4081 = vmatprep.subr.bf16.mxu0 %v6267_v15  ;;  %4491 = vmatprep.subr.bf16.mxu1 %v6270_v33  ;;  %v6352_v15 = vld [vmem:[#allocation5 + $0xba8] ss:$16 sps:$4 sm:$0xff]   ;;  %v6357_v33 = vld [vmem:[#allocation5 + $0xbc4] ss:$16 sps:$4 sm:$0xff]  }
 0x189   :  { %4082 = vmatpush1.bf16.msra.mxu0 %v6265_v34  ;;  %4492 = vmatpush1.bf16.msra.mxu1 %v6268_v35  ;;  %v6360_v34 = vld [vmem:[#allocation5 + $0xbcc] ss:$16 sps:$4 sm:$0xff]   ;;  %v756_v35 = vcombine.high %v6950_v21, %v6950_v21 }
 0x18a   :  { %4092 = vmatprep.subr.bf16.mxu0 %v6273_v25  ;;  %4502 = vmatprep.subr.bf16.mxu1 %v6276_v37  ;;  %v6355_v25 = vld [vmem:[#allocation5 + $0xbc0] ss:$16 sps:$4 sm:$0xff]   ;;  %v6358_v37 = vld [vmem:[#allocation5 + $0xbc8] ss:$16 sps:$4 sm:$0xff]  }
 0x18c   :  { %4084 = vmatmul.mubr.bf16.vlgmr.msra.gmra.mrb[0].mxu0 %v6967_v38  ;;  %4494 = vmatmul.mubr.bf16.vlgmr.msra.gmra.mrb[0].mxu1 %v6967_v38 }
 0x18d   :  { %4093 = vmatpush1.bf16.msra.mxu0 %v6271_v27  ;;  %4503 = vmatpush1.bf16.msra.mxu1 %v6274_v39  ;;  %v6363_v27 = vld [vmem:[#allocation5 + $0xbe4] ss:$16 sps:$4 sm:$0xff]   ;;  %v6366_v39 = vld [vmem:[#allocation5 + $0xbec] ss:$16 sps:$4 sm:$0xff]  }
 0x18e   :  { %4094 = vmatprep.subr.bf16.mxu0 %v6279_v40  ;;  %4504 = vmatprep.subr.bf16.mxu1 %v6282_v41  ;;  %v6976_v40 = vrot.slane %v756_v35, %v6916_v49  ;;  %v6361_v41 = vld [vmem:[#allocation5 + $0xbe0] ss:$16 sps:$4 sm:$0xff]   ;;  %v6442_v35 = vld [vmem:[#allocation5 + $0xd88] ss:$16 sps:$4 sm:$0xff]  }
 0x18f   :  { %4124 = vmatprep.mubr.bf16.mxu0 %v803_v43  ;;  %4534 = vmatprep.mubr.bf16.mxu1 %v803_v43  ;;  %v6364_v43 = vld [vmem:[#allocation5 + $0xbe8] ss:$16 sps:$4 sm:$0xff]  }
 0x190   :  { %v772_v21 = vcombine.high %v6976_v40, %v6976_v40 }
 0x191   :  { %4095 = vmatpush1.bf16.msra.mxu0 %v6277_v44  ;;  %4505 = vmatpush1.bf16.msra.mxu1 %v6280_v28  ;;  %v6369_v44 = vld [vmem:[#allocation5 + $0xc04] ss:$16 sps:$4 sm:$0xff]   ;;  %v6372_v28 = vld [vmem:[#allocation5 + $0xc0c] ss:$16 sps:$4 sm:$0xff]  }
 0x192   :  { %4096 = vmatprep.subr.bf16.mxu0 %v6285_v45  ;;  %4506 = vmatprep.subr.bf16.mxu1 %v6288_v46  ;;  %v801_v45 = vcombine.high %v6967_v38, %v6967_v38  ;;  %v6367_v46 = vld [vmem:[#allocation5 + $0xc00] ss:$16 sps:$4 sm:$0xff]   ;;  %v6381_v38 = vld [vmem:[#allocation5 + $0xc44] ss:$16 sps:$4 sm:$0xff]  }
 0x195   :  { %4097 = vmatpush1.bf16.msra.mxu0 %v6283_v47  ;;  %4507 = vmatpush1.bf16.msra.mxu1 %v6286_v48  ;;  %v6370_v47 = vld [vmem:[#allocation5 + $0xc08] ss:$16 sps:$4 sm:$0xff]   ;;  %v6375_v48 = vld [vmem:[#allocation5 + $0xc24] ss:$16 sps:$4 sm:$0xff]  }
 0x196   :  { %4098 = vmatprep.subr.bf16.mxu0 %v6291_v36  ;;  %4508 = vmatprep.subr.bf16.mxu1 %v6294_v50  ;;  %v6378_v36 = vld [vmem:[#allocation5 + $0xc2c] ss:$16 sps:$4 sm:$0xff]   ;;  %v6983_v50 = vrot.slane %v772_v21, %v6916_v49  ;;  %v6459_v21 = vld [vmem:[#allocation5 + $0xde4] ss:$16 sps:$4 sm:$0xff]  }
 0x199   :  { %4099 = vmatpush1.bf16.msra.mxu0 %v6289_v51  ;;  %4509 = vmatpush1.bf16.msra.mxu1 %v6292_v53  ;;  %v6373_v51 = vld [vmem:[#allocation5 + $0xc20] ss:$16 sps:$4 sm:$0xff]   ;;  %v6376_v53 = vld [vmem:[#allocation5 + $0xc28] ss:$16 sps:$4 sm:$0xff]  }
 0x19a   :  { %4100 = vmatprep.subr.bf16.mxu0 %v6297_v54  ;;  %4510 = vmatprep.subr.bf16.mxu1 %v6300_v55  ;;  %v6384_v54 = vld [vmem:[#allocation5 + $0xc4c] ss:$16 sps:$4 sm:$0xff]   ;;  %v6379_v55 = vld [vmem:[#allocation5 + $0xc40] ss:$16 sps:$4 sm:$0xff]  }
 0x19d   :  { %4101 = vmatpush1.bf16.msra.mxu0 %v6295_v56  ;;  %4511 = vmatpush1.bf16.msra.mxu1 %v6298_v57  ;;  %v6382_v56 = vld [vmem:[#allocation5 + $0xc48] ss:$16 sps:$4 sm:$0xff]   ;;  %v6387_v57 = vld [vmem:[#allocation5 + $0xc64] ss:$16 sps:$4 sm:$0xff]  }
 0x19e   :  { %4102 = vmatprep.subr.bf16.mxu0 %v6303_v58  ;;  %4512 = vmatprep.subr.bf16.mxu1 %v6306_v59  ;;  %v6390_v58 = vld [vmem:[#allocation5 + $0xc6c] ss:$16 sps:$4 sm:$0xff]   ;;  %v6385_v59 = vld [vmem:[#allocation5 + $0xc60] ss:$16 sps:$4 sm:$0xff]  }
 0x1a1   :  { %4103 = vmatpush1.bf16.msra.mxu0 %v6301_v60  ;;  %4513 = vmatpush1.bf16.msra.mxu1 %v6304_v61  ;;  %v6388_v60 = vld [vmem:[#allocation5 + $0xc68] ss:$16 sps:$4 sm:$0xff]   ;;  %v6393_v61 = vld [vmem:[#allocation5 + $0xc84] ss:$16 sps:$4 sm:$0xff]  }
 0x1a2   :  { %4104 = vmatprep.subr.bf16.mxu0 %v6309_v62  ;;  %4514 = vmatprep.subr.bf16.mxu1 %v6312_v63  ;;  %v6396_v62 = vld [vmem:[#allocation5 + $0xc8c] ss:$16 sps:$4 sm:$0xff]   ;;  %v6391_v63 = vld [vmem:[#allocation5 + $0xc80] ss:$16 sps:$4 sm:$0xff]  }
 0x1a5   :  { %4105 = vmatpush1.bf16.msra.mxu0 %v6307_v0  ;;  %4515 = vmatpush1.bf16.msra.mxu1 %v6310_v1  ;;  %v6394_v0 = vld [vmem:[#allocation5 + $0xc88] ss:$16 sps:$4 sm:$0xff]   ;;  %v6399_v1 = vld [vmem:[#allocation5 + $0xca4] ss:$16 sps:$4 sm:$0xff]  }
 0x1a6   :  { %4106 = vmatprep.subr.bf16.mxu0 %v6315_v2  ;;  %4516 = vmatprep.subr.bf16.mxu1 %v6318_v3  ;;  %v6402_v2 = vld [vmem:[#allocation5 + $0xcac] ss:$16 sps:$4 sm:$0xff]   ;;  %v6397_v3 = vld [vmem:[#allocation5 + $0xca0] ss:$16 sps:$4 sm:$0xff]  }
 0x1a9   :  { %4107 = vmatpush1.bf16.msra.mxu0 %v6313_v4  ;;  %4517 = vmatpush1.bf16.msra.mxu1 %v6316_v5  ;;  %v6400_v4 = vld [vmem:[#allocation5 + $0xca8] ss:$16 sps:$4 sm:$0xff]   ;;  %v6405_v5 = vld [vmem:[#allocation5 + $0xcc4] ss:$16 sps:$4 sm:$0xff]  }
 0x1aa   :  { %4108 = vmatprep.subr.bf16.mxu0 %v6321_v6  ;;  %4518 = vmatprep.subr.bf16.mxu1 %v6324_v7  ;;  %v6408_v6 = vld [vmem:[#allocation5 + $0xccc] ss:$16 sps:$4 sm:$0xff]   ;;  %v6403_v7 = vld [vmem:[#allocation5 + $0xcc0] ss:$16 sps:$4 sm:$0xff]  }
 0x1ad   :  { %4109 = vmatpush1.bf16.msra.mxu0 %v6319_v8  ;;  %4519 = vmatpush1.bf16.msra.mxu1 %v6322_v9  ;;  %v6406_v8 = vld [vmem:[#allocation5 + $0xcc8] ss:$16 sps:$4 sm:$0xff]   ;;  %v6411_v9 = vld [vmem:[#allocation5 + $0xce4] ss:$16 sps:$4 sm:$0xff]  }
 0x1ae   :  { %4110 = vmatprep.subr.bf16.mxu0 %v6327_v10  ;;  %4520 = vmatprep.subr.bf16.mxu1 %v6330_v11  ;;  %v6414_v10 = vld [vmem:[#allocation5 + $0xcec] ss:$16 sps:$4 sm:$0xff]   ;;  %v6409_v11 = vld [vmem:[#allocation5 + $0xce0] ss:$16 sps:$4 sm:$0xff]  }
 0x1b1   :  { %4111 = vmatpush1.bf16.msra.mxu0 %v6325_v12  ;;  %4521 = vmatpush1.bf16.msra.mxu1 %v6328_v14  ;;  %v6412_v12 = vld [vmem:[#allocation5 + $0xce8] ss:$16 sps:$4 sm:$0xff]   ;;  %v6417_v14 = vld [vmem:[#allocation5 + $0xd04] ss:$16 sps:$4 sm:$0xff]  }
 0x1b2   :  { %4112 = vmatprep.subr.bf16.mxu0 %v6333_v16  ;;  %4522 = vmatprep.subr.bf16.mxu1 %v6336_v17  ;;  %v6420_v16 = vld [vmem:[#allocation5 + $0xd0c] ss:$16 sps:$4 sm:$0xff]   ;;  %v6415_v17 = vld [vmem:[#allocation5 + $0xd00] ss:$16 sps:$4 sm:$0xff]  }
 0x1b5   :  { %4113 = vmatpush1.bf16.msra.mxu0 %v6331_v18  ;;  %4523 = vmatpush1.bf16.msra.mxu1 %v6334_v19  ;;  %v6418_v18 = vld [vmem:[#allocation5 + $0xd08] ss:$16 sps:$4 sm:$0xff]   ;;  %v6423_v19 = vld [vmem:[#allocation5 + $0xd24] ss:$16 sps:$4 sm:$0xff]  }
 0x1b6   :  { %4114 = vmatprep.subr.bf16.mxu0 %v6339_v52  ;;  %4524 = vmatprep.subr.bf16.mxu1 %v6342_v20  ;;  %v6426_v52 = vld [vmem:[#allocation5 + $0xd2c] ss:$16 sps:$4 sm:$0xff]   ;;  %v6421_v20 = vld [vmem:[#allocation5 + $0xd20] ss:$16 sps:$4 sm:$0xff]  }
 0x1b9   :  { %4115 = vmatpush1.bf16.msra.mxu0 %v6337_v22  ;;  %4525 = vmatpush1.bf16.msra.mxu1 %v6340_v23  ;;  %v6424_v22 = vld [vmem:[#allocation5 + $0xd28] ss:$16 sps:$4 sm:$0xff]   ;;  %v6429_v23 = vld [vmem:[#allocation5 + $0xd44] ss:$16 sps:$4 sm:$0xff]  }
 0x1ba   :  { %4116 = vmatprep.subr.bf16.mxu0 %v6345_v24  ;;  %4526 = vmatprep.subr.bf16.mxu1 %v6348_v26  ;;  %v6432_v24 = vld [vmem:[#allocation5 + $0xd4c] ss:$16 sps:$4 sm:$0xff]   ;;  %v6427_v26 = vld [vmem:[#allocation5 + $0xd40] ss:$16 sps:$4 sm:$0xff]  }
 0x1bd   :  { %4117 = vmatpush1.bf16.msra.mxu0 %v6343_v13  ;;  %4527 = vmatpush1.bf16.msra.mxu1 %v6346_v29  ;;  %v6430_v13 = vld [vmem:[#allocation5 + $0xd48] ss:$16 sps:$4 sm:$0xff]   ;;  %v6435_v29 = vld [vmem:[#allocation5 + $0xd64] ss:$16 sps:$4 sm:$0xff]  }
 0x1be   :  { %4118 = vmatprep.subr.bf16.mxu0 %v6351_v30  ;;  %4528 = vmatprep.subr.bf16.mxu1 %v6354_v31  ;;  %v6438_v30 = vld [vmem:[#allocation5 + $0xd6c] ss:$16 sps:$4 sm:$0xff]   ;;  %v6433_v31 = vld [vmem:[#allocation5 + $0xd60] ss:$16 sps:$4 sm:$0xff]  }
 0x1c1   :  { %4119 = vmatpush1.bf16.msra.mxu0 %v6349_v32  ;;  %4529 = vmatpush1.bf16.msra.mxu1 %v6352_v15  ;;  %v6436_v32 = vld [vmem:[#allocation5 + $0xd68] ss:$16 sps:$4 sm:$0xff]   ;;  %v6441_v15 = vld [vmem:[#allocation5 + $0xd84] ss:$16 sps:$4 sm:$0xff]  }
 0x1c2   :  { %4120 = vmatprep.subr.bf16.mxu0 %v6357_v33  ;;  %4530 = vmatprep.subr.bf16.mxu1 %v6360_v34  ;;  %v6444_v33 = vld [vmem:[#allocation5 + $0xd8c] ss:$16 sps:$4 sm:$0xff]   ;;  %v6439_v34 = vld [vmem:[#allocation5 + $0xd80] ss:$16 sps:$4 sm:$0xff]  }
 0x1c5   :  { %4121 = vmatpush1.bf16.msra.mxu0 %v6355_v25  ;;  %4531 = vmatpush1.bf16.msra.mxu1 %v6358_v37  ;;  %v6447_v25 = vld [vmem:[#allocation5 + $0xda4] ss:$16 sps:$4 sm:$0xff]   ;;  %v6450_v37 = vld [vmem:[#allocation5 + $0xdac] ss:$16 sps:$4 sm:$0xff]  }
 0x1c6   :  { %4122 = vmatprep.subr.bf16.mxu0 %v6363_v27  ;;  %4532 = vmatprep.subr.bf16.mxu1 %v6366_v39  ;;  %v6445_v27 = vld [vmem:[#allocation5 + $0xda0] ss:$16 sps:$4 sm:$0xff]   ;;  %v6448_v39 = vld [vmem:[#allocation5 + $0xda8] ss:$16 sps:$4 sm:$0xff]  }
 0x1c9   :  { %4123 = vmatpush1.bf16.msra.mxu0 %v6361_v41  ;;  %4533 = vmatpush1.bf16.msra.mxu1 %v6364_v43  ;;  %v6453_v41 = vld [vmem:[#allocation5 + $0xdc4] ss:$16 sps:$4 sm:$0xff]   ;;  %v6456_v43 = vld [vmem:[#allocation5 + $0xdcc] ss:$16 sps:$4 sm:$0xff]  }
 0x1ca   :  { %4133 = vmatprep.subr.bf16.mxu0 %v6369_v44  ;;  %4543 = vmatprep.subr.bf16.mxu1 %v6372_v28  ;;  %v6451_v44 = vld [vmem:[#allocation5 + $0xdc0] ss:$16 sps:$4 sm:$0xff]   ;;  %v6454_v28 = vld [vmem:[#allocation5 + $0xdc8] ss:$16 sps:$4 sm:$0xff]  }
 0x1cc   :  { %4125 = vmatmul.mubr.bf16.vlgmr.msra.gmra.mrb[0].mxu0 %v801_v45  ;;  %4535 = vmatmul.mubr.bf16.vlgmr.msra.gmra.mrb[0].mxu1 %v801_v45  ;;  %v6462_v45 = vld [vmem:[#allocation5 + $0xdec] ss:$16 sps:$4 sm:$0xff]  }
 0x1cd   :  { %4134 = vmatpush1.bf16.msra.mxu0 %v6367_v46  ;;  %4544 = vmatpush1.bf16.msra.mxu1 %v6370_v47  ;;  %v6457_v46 = vld [vmem:[#allocation5 + $0xde0] ss:$16 sps:$4 sm:$0xff]   ;;  %v6460_v47 = vld [vmem:[#allocation5 + $0xde8] ss:$16 sps:$4 sm:$0xff]  }
 0x1ce   :  { %4135 = vmatprep.subr.bf16.mxu0 %v6375_v48  ;;  %4545 = vmatprep.subr.bf16.mxu1 %v6378_v36  ;;  %v6466_v48 = vld [vmem:[#allocation5 + $0xe04] ss:$16 sps:$4 sm:$0xff]   ;;  %v6469_v36 = vld [vmem:[#allocation5 + $0xe0c] ss:$16 sps:$4 sm:$0xff]  }
 0x1cf   :  { %4165 = vmatprep.mubr.bf16.mxu0 %v6983_v50  ;;  %4575 = vmatprep.mubr.bf16.mxu1 %v6983_v50 }
 0x1d1   :  { %4136 = vmatpush1.bf16.msra.mxu0 %v6373_v51  ;;  %4546 = vmatpush1.bf16.msra.mxu1 %v6376_v53  ;;  %v6989_v51 = vrot.slane %v6976_v40, %v6916_v49  ;;  %v6464_v53 = vld [vmem:[#allocation5 + $0xe00] ss:$16 sps:$4 sm:$0xff]   ;;  %v6473_v40 = vld [vmem:[#allocation5 + $0xe28] ss:$16 sps:$4 sm:$0xff]  }
 0x1d2   :  { %4137 = vmatprep.subr.bf16.mxu0 %v6381_v38  ;;  %4547 = vmatprep.subr.bf16.mxu1 %v6384_v54  ;;  %v6467_v38 = vld [vmem:[#allocation5 + $0xe08] ss:$16 sps:$4 sm:$0xff]   ;;  %v6472_v54 = vld [vmem:[#allocation5 + $0xe24] ss:$16 sps:$4 sm:$0xff]  }
 0x1d5   :  { %4138 = vmatpush1.bf16.msra.mxu0 %v6379_v55  ;;  %4548 = vmatpush1.bf16.msra.mxu1 %v6382_v56  ;;  %v6475_v55 = vld [vmem:[#allocation5 + $0xe2c] ss:$16 sps:$4 sm:$0xff]   ;;  %v804_v56 = vcombine.high %v6983_v50, %v6983_v50  ;;  %v6484_v50 = vld [vmem:[#allocation5 + $0xe64] ss:$16 sps:$4 sm:$0xff]  }
 0x1d6   :  { %4139 = vmatprep.subr.bf16.mxu0 %v6387_v57  ;;  %4549 = vmatprep.subr.bf16.mxu1 %v6390_v58  ;;  %v6470_v57 = vld [vmem:[#allocation5 + $0xe20] ss:$16 sps:$4 sm:$0xff]   ;;  %v6478_v58 = vld [vmem:[#allocation5 + $0xe44] ss:$16 sps:$4 sm:$0xff]  }
 0x1d9   :  { %4140 = vmatpush1.bf16.msra.mxu0 %v6385_v59  ;;  %4550 = vmatpush1.bf16.msra.mxu1 %v6388_v60  ;;  %v6481_v59 = vld [vmem:[#allocation5 + $0xe4c] ss:$16 sps:$4 sm:$0xff]   ;;  %v6476_v60 = vld [vmem:[#allocation5 + $0xe40] ss:$16 sps:$4 sm:$0xff]  }
 0x1da   :  { %4141 = vmatprep.subr.bf16.mxu0 %v6393_v61  ;;  %4551 = vmatprep.subr.bf16.mxu1 %v6396_v62  ;;  %v6479_v61 = vld [vmem:[#allocation5 + $0xe48] ss:$16 sps:$4 sm:$0xff]   ;;  %v6487_v62 = vld [vmem:[#allocation5 + $0xe6c] ss:$16 sps:$4 sm:$0xff]  }
 0x1dd   :  { %4142 = vmatpush1.bf16.msra.mxu0 %v6391_v63  ;;  %4552 = vmatpush1.bf16.msra.mxu1 %v6394_v0  ;;  %v6482_v63 = vld [vmem:[#allocation5 + $0xe60] ss:$16 sps:$4 sm:$0xff]   ;;  %v6485_v0 = vld [vmem:[#allocation5 + $0xe68] ss:$16 sps:$4 sm:$0xff]  }
 0x1de   :  { %4143 = vmatprep.subr.bf16.mxu0 %v6399_v1  ;;  %4553 = vmatprep.subr.bf16.mxu1 %v6402_v2  ;;  %v6490_v1 = vld [vmem:[#allocation5 + $0xe84] ss:$16 sps:$4 sm:$0xff]   ;;  %v6493_v2 = vld [vmem:[#allocation5 + $0xe8c] ss:$16 sps:$4 sm:$0xff]  }
 0x1e1   :  { %4144 = vmatpush1.bf16.msra.mxu0 %v6397_v3  ;;  %4554 = vmatpush1.bf16.msra.mxu1 %v6400_v4  ;;  %v6488_v3 = vld [vmem:[#allocation5 + $0xe80] ss:$16 sps:$4 sm:$0xff]   ;;  %v6491_v4 = vld [vmem:[#allocation5 + $0xe88] ss:$16 sps:$4 sm:$0xff]  }
 0x1e2   :  { %4145 = vmatprep.subr.bf16.mxu0 %v6405_v5  ;;  %4555 = vmatprep.subr.bf16.mxu1 %v6408_v6  ;;  %v6496_v5 = vld [vmem:[#allocation5 + $0xea4] ss:$16 sps:$4 sm:$0xff]   ;;  %v6499_v6 = vld [vmem:[#allocation5 + $0xeac] ss:$16 sps:$4 sm:$0xff]  }
 0x1e5   :  { %4146 = vmatpush1.bf16.msra.mxu0 %v6403_v7  ;;  %4556 = vmatpush1.bf16.msra.mxu1 %v6406_v8  ;;  %v6494_v7 = vld [vmem:[#allocation5 + $0xea0] ss:$16 sps:$4 sm:$0xff]   ;;  %v6497_v8 = vld [vmem:[#allocation5 + $0xea8] ss:$16 sps:$4 sm:$0xff]  }
 0x1e6   :  { %4147 = vmatprep.subr.bf16.mxu0 %v6411_v9  ;;  %4557 = vmatprep.subr.bf16.mxu1 %v6414_v10  ;;  %v6502_v9 = vld [vmem:[#allocation5 + $0xec4] ss:$16 sps:$4 sm:$0xff]   ;;  %v6505_v10 = vld [vmem:[#allocation5 + $0xecc] ss:$16 sps:$4 sm:$0xff]  }
 0x1e9   :  { %4148 = vmatpush1.bf16.msra.mxu0 %v6409_v11  ;;  %4558 = vmatpush1.bf16.msra.mxu1 %v6412_v12  ;;  %v6500_v11 = vld [vmem:[#allocation5 + $0xec0] ss:$16 sps:$4 sm:$0xff]   ;;  %v6503_v12 = vld [vmem:[#allocation5 + $0xec8] ss:$16 sps:$4 sm:$0xff]  }
 0x1ea   :  { %4149 = vmatprep.subr.bf16.mxu0 %v6417_v14  ;;  %4559 = vmatprep.subr.bf16.mxu1 %v6420_v16  ;;  %v6508_v14 = vld [vmem:[#allocation5 + $0xee4] ss:$16 sps:$4 sm:$0xff]   ;;  %v6511_v16 = vld [vmem:[#allocation5 + $0xeec] ss:$16 sps:$4 sm:$0xff]  }
 0x1ed   :  { %4150 = vmatpush1.bf16.msra.mxu0 %v6415_v17  ;;  %4560 = vmatpush1.bf16.msra.mxu1 %v6418_v18  ;;  %v6506_v17 = vld [vmem:[#allocation5 + $0xee0] ss:$16 sps:$4 sm:$0xff]   ;;  %v6509_v18 = vld [vmem:[#allocation5 + $0xee8] ss:$16 sps:$4 sm:$0xff]  }
 0x1ee   :  { %4151 = vmatprep.subr.bf16.mxu0 %v6423_v19  ;;  %4561 = vmatprep.subr.bf16.mxu1 %v6426_v52  ;;  %v6514_v19 = vld [vmem:[#allocation5 + $0xf04] ss:$16 sps:$4 sm:$0xff]   ;;  %v6517_v52 = vld [vmem:[#allocation5 + $0xf0c] ss:$16 sps:$4 sm:$0xff]  }
 0x1f1   :  { %4152 = vmatpush1.bf16.msra.mxu0 %v6421_v20  ;;  %4562 = vmatpush1.bf16.msra.mxu1 %v6424_v22  ;;  %v6512_v20 = vld [vmem:[#allocation5 + $0xf00] ss:$16 sps:$4 sm:$0xff]   ;;  %v6515_v22 = vld [vmem:[#allocation5 + $0xf08] ss:$16 sps:$4 sm:$0xff]  }
 0x1f2   :  { %4153 = vmatprep.subr.bf16.mxu0 %v6429_v23  ;;  %4563 = vmatprep.subr.bf16.mxu1 %v6432_v24  ;;  %v6520_v23 = vld [vmem:[#allocation5 + $0xf24] ss:$16 sps:$4 sm:$0xff]   ;;  %v6523_v24 = vld [vmem:[#allocation5 + $0xf2c] ss:$16 sps:$4 sm:$0xff]  }
 0x1f5   :  { %4154 = vmatpush1.bf16.msra.mxu0 %v6427_v26  ;;  %4564 = vmatpush1.bf16.msra.mxu1 %v6430_v13  ;;  %v6518_v26 = vld [vmem:[#allocation5 + $0xf20] ss:$16 sps:$4 sm:$0xff]   ;;  %v6521_v13 = vld [vmem:[#allocation5 + $0xf28] ss:$16 sps:$4 sm:$0xff]  }
 0x1f6   :  { %4155 = vmatprep.subr.bf16.mxu0 %v6435_v29  ;;  %4565 = vmatprep.subr.bf16.mxu1 %v6438_v30  ;;  %v6526_v29 = vld [vmem:[#allocation5 + $0xf44] ss:$16 sps:$4 sm:$0xff]   ;;  %v6529_v30 = vld [vmem:[#allocation5 + $0xf4c] ss:$16 sps:$4 sm:$0xff]  }
 0x1f9   :  { %4156 = vmatpush1.bf16.msra.mxu0 %v6433_v31  ;;  %4566 = vmatpush1.bf16.msra.mxu1 %v6436_v32  ;;  %v6524_v31 = vld [vmem:[#allocation5 + $0xf40] ss:$16 sps:$4 sm:$0xff]   ;;  %v6527_v32 = vld [vmem:[#allocation5 + $0xf48] ss:$16 sps:$4 sm:$0xff]  }
 0x1fa   :  { %4157 = vmatprep.subr.bf16.mxu0 %v6441_v15  ;;  %4567 = vmatprep.subr.bf16.mxu1 %v6444_v33  ;;  %v6532_v15 = vld [vmem:[#allocation5 + $0xf64] ss:$16 sps:$4 sm:$0xff]   ;;  %v6535_v33 = vld [vmem:[#allocation5 + $0xf6c] ss:$16 sps:$4 sm:$0xff]  }
 0x1fd   :  { %4158 = vmatpush1.bf16.msra.mxu0 %v6439_v34  ;;  %4568 = vmatpush1.bf16.msra.mxu1 %v6442_v35  ;;  %v6530_v34 = vld [vmem:[#allocation5 + $0xf60] ss:$16 sps:$4 sm:$0xff]   ;;  %v6533_v35 = vld [vmem:[#allocation5 + $0xf68] ss:$16 sps:$4 sm:$0xff]  }
 0x1fe   :  { %4159 = vmatprep.subr.bf16.mxu0 %v6447_v25  ;;  %4569 = vmatprep.subr.bf16.mxu1 %v6450_v37  ;;  %v6538_v25 = vld [vmem:[#allocation5 + $0xf84] ss:$16 sps:$4 sm:$0xff]   ;;  %v6541_v37 = vld [vmem:[#allocation5 + $0xf8c] ss:$16 sps:$4 sm:$0xff]  }
 0x201   :  { %4160 = vmatpush1.bf16.msra.mxu0 %v6445_v27  ;;  %4570 = vmatpush1.bf16.msra.mxu1 %v6448_v39  ;;  %v6536_v27 = vld [vmem:[#allocation5 + $0xf80] ss:$16 sps:$4 sm:$0xff]   ;;  %v6539_v39 = vld [vmem:[#allocation5 + $0xf88] ss:$16 sps:$4 sm:$0xff]  }
 0x202   :  { %4161 = vmatprep.subr.bf16.mxu0 %v6453_v41  ;;  %4571 = vmatprep.subr.bf16.mxu1 %v6456_v43  ;;  %v6544_v41 = vld [vmem:[#allocation5 + $0xfa4] ss:$16 sps:$4 sm:$0xff]   ;;  %v6547_v43 = vld [vmem:[#allocation5 + $0xfac] ss:$16 sps:$4 sm:$0xff]  }
 0x205   :  { %4162 = vmatpush1.bf16.msra.mxu0 %v6451_v44  ;;  %4572 = vmatpush1.bf16.msra.mxu1 %v6454_v28  ;;  %v6542_v44 = vld [vmem:[#allocation5 + $0xfa0] ss:$16 sps:$4 sm:$0xff]   ;;  %v6545_v28 = vld [vmem:[#allocation5 + $0xfa8] ss:$16 sps:$4 sm:$0xff]  }
 0x206   :  { %4163 = vmatprep.subr.bf16.mxu0 %v6459_v21  ;;  %4573 = vmatprep.subr.bf16.mxu1 %v6462_v45  ;;  %v6550_v21 = vld [vmem:[#allocation5 + $0xfc4] ss:$16 sps:$4 sm:$0xff]   ;;  %v6553_v45 = vld [vmem:[#allocation5 + $0xfcc] ss:$16 sps:$4 sm:$0xff]  }
 0x209   :  { %4164 = vmatpush1.bf16.msra.mxu0 %v6457_v46  ;;  %4574 = vmatpush1.bf16.msra.mxu1 %v6460_v47  ;;  %v6548_v46 = vld [vmem:[#allocation5 + $0xfc0] ss:$16 sps:$4 sm:$0xff]   ;;  %v6551_v47 = vld [vmem:[#allocation5 + $0xfc8] ss:$16 sps:$4 sm:$0xff]  }
 0x20a   :  { %4174 = vmatprep.subr.bf16.mxu0 %v6466_v48  ;;  %4584 = vmatprep.subr.bf16.mxu1 %v6469_v36  ;;  %v6556_v48 = vld [vmem:[#allocation5 + $0xfe4] ss:$16 sps:$4 sm:$0xff]   ;;  %v6559_v36 = vld [vmem:[#allocation5 + $0xfec] ss:$16 sps:$4 sm:$0xff]  }
 0x20c   :  { %4166 = vmatmul.mubr.bf16.vlgmr.msra.gmra.mrb[0].mxu0 %v6989_v51  ;;  %4576 = vmatmul.mubr.bf16.vlgmr.msra.gmra.mrb[0].mxu1 %v6989_v51 }
 0x20d   :  { %4175 = vmatpush1.bf16.msra.mxu0 %v6464_v53  ;;  %4585 = vmatpush1.bf16.msra.mxu1 %v6467_v38  ;;  %v6995_v53 = vld.sshfl [vmem:[#allocation2 + $0x10] sm:$0x13 pattern:$0x75316420]  ;;  %v6554_v38 = vld [vmem:[#allocation5 + $0xfe0] ss:$16 sps:$4 sm:$0xff]  }
 0x20e   :  { %4176 = vmatprep.subr.bf16.mxu0 %v6472_v54  ;;  %4586 = vmatprep.subr.bf16.mxu1 %v6475_v55  ;;  %v6557_v54 = vld [vmem:[#allocation5 + $0xfe8] ss:$16 sps:$4 sm:$0xff]   ;;  %v6562_v55 = vld [vmem:[#allocation5 + $0x1004] ss:$16 sps:$4 sm:$0xff]  }
 0x20f   :  { %4206 = vmatprep.mubr.bf16.mxu0 %v804_v56  ;;  %4616 = vmatprep.mubr.bf16.mxu1 %v804_v56  ;;  %v6565_v56 = vld [vmem:[#allocation5 + $0x100c] ss:$16 sps:$4 sm:$0xff]  }
 0x211   :  { %4177 = vmatpush1.bf16.msra.mxu0 %v6470_v57  ;;  %4587 = vmatpush1.bf16.msra.mxu1 %v6473_v40  ;;  %v812_v57 = vcombine.high %v6995_v53, %v6995_v53  ;;  %v802_v40 = vcombine.high %v6989_v51, %v6989_v51  ;;  %v6577_v51 = vld [vmem:[#allocation5 + $0x104c] ss:$16 sps:$4 sm:$0xff]  }
 0x212   :  { %4178 = vmatprep.subr.bf16.mxu0 %v6478_v58  ;;  %4588 = vmatprep.subr.bf16.mxu1 %v6481_v59  ;;  %v6560_v58 = vld [vmem:[#allocation5 + $0x1000] ss:$16 sps:$4 sm:$0xff]   ;;  %v6563_v59 = vld [vmem:[#allocation5 + $0x1008] ss:$16 sps:$4 sm:$0xff]  }
 0x215   :  { %4179 = vmatpush1.bf16.msra.mxu0 %v6476_v60  ;;  %4589 = vmatpush1.bf16.msra.mxu1 %v6479_v61  ;;  %v6568_v60 = vld [vmem:[#allocation5 + $0x1024] ss:$16 sps:$4 sm:$0xff]   ;;  %v6571_v61 = vld [vmem:[#allocation5 + $0x102c] ss:$16 sps:$4 sm:$0xff]  }
 0x216   :  { %4180 = vmatprep.subr.bf16.mxu0 %v6484_v50  ;;  %4590 = vmatprep.subr.bf16.mxu1 %v6487_v62  ;;  %v826_v50 = vrot.slane %v812_v57, %v6916_v49  ;;  %v6566_v62 = vld [vmem:[#allocation5 + $0x1020] ss:$16 sps:$4 sm:$0xff]   ;;  %v6652_v57 = vld [vmem:[#allocation5 + $0x11e4] ss:$16 sps:$4 sm:$0xff]  }
 0x219   :  { %4181 = vmatpush1.bf16.msra.mxu0 %v6482_v63  ;;  %4591 = vmatpush1.bf16.msra.mxu1 %v6485_v0  ;;  %v6569_v63 = vld [vmem:[#allocation5 + $0x1028] ss:$16 sps:$4 sm:$0xff]   ;;  %v6574_v0 = vld [vmem:[#allocation5 + $0x1044] ss:$16 sps:$4 sm:$0xff]  }
 0x21a   :  { %4182 = vmatprep.subr.bf16.mxu0 %v6490_v1  ;;  %4592 = vmatprep.subr.bf16.mxu1 %v6493_v2  ;;  %v6572_v1 = vld [vmem:[#allocation5 + $0x1040] ss:$16 sps:$4 sm:$0xff]   ;;  %v6575_v2 = vld [vmem:[#allocation5 + $0x1048] ss:$16 sps:$4 sm:$0xff]  }
 0x21d   :  { %4183 = vmatpush1.bf16.msra.mxu0 %v6488_v3  ;;  %4593 = vmatpush1.bf16.msra.mxu1 %v6491_v4  ;;  %v6580_v3 = vld [vmem:[#allocation5 + $0x1064] ss:$16 sps:$4 sm:$0xff]   ;;  %v6583_v4 = vld [vmem:[#allocation5 + $0x106c] ss:$16 sps:$4 sm:$0xff]  }
 0x21e   :  { %4184 = vmatprep.subr.bf16.mxu0 %v6496_v5  ;;  %4594 = vmatprep.subr.bf16.mxu1 %v6499_v6  ;;  %v6578_v5 = vld [vmem:[#allocation5 + $0x1060] ss:$16 sps:$4 sm:$0xff]   ;;  %v6581_v6 = vld [vmem:[#allocation5 + $0x1068] ss:$16 sps:$4 sm:$0xff]  }
 0x221   :  { %4185 = vmatpush1.bf16.msra.mxu0 %v6494_v7  ;;  %4595 = vmatpush1.bf16.msra.mxu1 %v6497_v8  ;;  %v6586_v7 = vld [vmem:[#allocation5 + $0x1084] ss:$16 sps:$4 sm:$0xff]   ;;  %v6589_v8 = vld [vmem:[#allocation5 + $0x108c] ss:$16 sps:$4 sm:$0xff]  }
 0x222   :  { %4186 = vmatprep.subr.bf16.mxu0 %v6502_v9  ;;  %4596 = vmatprep.subr.bf16.mxu1 %v6505_v10  ;;  %v6584_v9 = vld [vmem:[#allocation5 + $0x1080] ss:$16 sps:$4 sm:$0xff]   ;;  %v6587_v10 = vld [vmem:[#allocation5 + $0x1088] ss:$16 sps:$4 sm:$0xff]  }
 0x225   :  { %4187 = vmatpush1.bf16.msra.mxu0 %v6500_v11  ;;  %4597 = vmatpush1.bf16.msra.mxu1 %v6503_v12  ;;  %v6592_v11 = vld [vmem:[#allocation5 + $0x10a4] ss:$16 sps:$4 sm:$0xff]   ;;  %v6595_v12 = vld [vmem:[#allocation5 + $0x10ac] ss:$16 sps:$4 sm:$0xff]  }
 0x226   :  { %4188 = vmatprep.subr.bf16.mxu0 %v6508_v14  ;;  %4598 = vmatprep.subr.bf16.mxu1 %v6511_v16  ;;  %v6590_v14 = vld [vmem:[#allocation5 + $0x10a0] ss:$16 sps:$4 sm:$0xff]   ;;  %v6593_v16 = vld [vmem:[#allocation5 + $0x10a8] ss:$16 sps:$4 sm:$0xff]  }
 0x229   :  { %4189 = vmatpush1.bf16.msra.mxu0 %v6506_v17  ;;  %4599 = vmatpush1.bf16.msra.mxu1 %v6509_v18  ;;  %v6598_v17 = vld [vmem:[#allocation5 + $0x10c4] ss:$16 sps:$4 sm:$0xff]   ;;  %v6601_v18 = vld [vmem:[#allocation5 + $0x10cc] ss:$16 sps:$4 sm:$0xff]  }
 0x22a   :  { %4190 = vmatprep.subr.bf16.mxu0 %v6514_v19  ;;  %4600 = vmatprep.subr.bf16.mxu1 %v6517_v52  ;;  %v6596_v19 = vld [vmem:[#allocation5 + $0x10c0] ss:$16 sps:$4 sm:$0xff]   ;;  %v6599_v52 = vld [vmem:[#allocation5 + $0x10c8] ss:$16 sps:$4 sm:$0xff]  }
 0x22d   :  { %4191 = vmatpush1.bf16.msra.mxu0 %v6512_v20  ;;  %4601 = vmatpush1.bf16.msra.mxu1 %v6515_v22  ;;  %v6604_v20 = vld [vmem:[#allocation5 + $0x10e4] ss:$16 sps:$4 sm:$0xff]   ;;  %v6607_v22 = vld [vmem:[#allocation5 + $0x10ec] ss:$16 sps:$4 sm:$0xff]  }
 0x22e   :  { %4192 = vmatprep.subr.bf16.mxu0 %v6520_v23  ;;  %4602 = vmatprep.subr.bf16.mxu1 %v6523_v24  ;;  %v6602_v23 = vld [vmem:[#allocation5 + $0x10e0] ss:$16 sps:$4 sm:$0xff]   ;;  %v6605_v24 = vld [vmem:[#allocation5 + $0x10e8] ss:$16 sps:$4 sm:$0xff]  }
 0x231   :  { %4193 = vmatpush1.bf16.msra.mxu0 %v6518_v26  ;;  %4603 = vmatpush1.bf16.msra.mxu1 %v6521_v13  ;;  %v6610_v26 = vld [vmem:[#allocation5 + $0x1104] ss:$16 sps:$4 sm:$0xff]   ;;  %v6613_v13 = vld [vmem:[#allocation5 + $0x110c] ss:$16 sps:$4 sm:$0xff]  }
 0x232   :  { %4194 = vmatprep.subr.bf16.mxu0 %v6526_v29  ;;  %4604 = vmatprep.subr.bf16.mxu1 %v6529_v30  ;;  %v6608_v29 = vld [vmem:[#allocation5 + $0x1100] ss:$16 sps:$4 sm:$0xff]   ;;  %v6611_v30 = vld [vmem:[#allocation5 + $0x1108] ss:$16 sps:$4 sm:$0xff]  }
 0x235   :  { %4195 = vmatpush1.bf16.msra.mxu0 %v6524_v31  ;;  %4605 = vmatpush1.bf16.msra.mxu1 %v6527_v32  ;;  %v6616_v31 = vld [vmem:[#allocation5 + $0x1124] ss:$16 sps:$4 sm:$0xff]   ;;  %v6619_v32 = vld [vmem:[#allocation5 + $0x112c] ss:$16 sps:$4 sm:$0xff]  }
 0x236   :  { %4196 = vmatprep.subr.bf16.mxu0 %v6532_v15  ;;  %4606 = vmatprep.subr.bf16.mxu1 %v6535_v33  ;;  %v6614_v15 = vld [vmem:[#allocation5 + $0x1120] ss:$16 sps:$4 sm:$0xff]   ;;  %v6617_v33 = vld [vmem:[#allocation5 + $0x1128] ss:$16 sps:$4 sm:$0xff]  }
 0x239   :  { %4197 = vmatpush1.bf16.msra.mxu0 %v6530_v34  ;;  %4607 = vmatpush1.bf16.msra.mxu1 %v6533_v35  ;;  %v6622_v34 = vld [vmem:[#allocation5 + $0x1144] ss:$16 sps:$4 sm:$0xff]   ;;  %v6625_v35 = vld [vmem:[#allocation5 + $0x114c] ss:$16 sps:$4 sm:$0xff]  }
 0x23a   :  { %4198 = vmatprep.subr.bf16.mxu0 %v6538_v25  ;;  %4608 = vmatprep.subr.bf16.mxu1 %v6541_v37  ;;  %v6620_v25 = vld [vmem:[#allocation5 + $0x1140] ss:$16 sps:$4 sm:$0xff]   ;;  %v6623_v37 = vld [vmem:[#allocation5 + $0x1148] ss:$16 sps:$4 sm:$0xff]  }
 0x23d   :  { %4199 = vmatpush1.bf16.msra.mxu0 %v6536_v27  ;;  %4609 = vmatpush1.bf16.msra.mxu1 %v6539_v39  ;;  %v6628_v27 = vld [vmem:[#allocation5 + $0x1164] ss:$16 sps:$4 sm:$0xff]   ;;  %v6631_v39 = vld [vmem:[#allocation5 + $0x116c] ss:$16 sps:$4 sm:$0xff]  }
 0x23e   :  { %4200 = vmatprep.subr.bf16.mxu0 %v6544_v41  ;;  %4610 = vmatprep.subr.bf16.mxu1 %v6547_v43  ;;  %v6626_v41 = vld [vmem:[#allocation5 + $0x1160] ss:$16 sps:$4 sm:$0xff]   ;;  %v6629_v43 = vld [vmem:[#allocation5 + $0x1168] ss:$16 sps:$4 sm:$0xff]  }
 0x241   :  { %4201 = vmatpush1.bf16.msra.mxu0 %v6542_v44  ;;  %4611 = vmatpush1.bf16.msra.mxu1 %v6545_v28  ;;  %v6634_v44 = vld [vmem:[#allocation5 + $0x1184] ss:$16 sps:$4 sm:$0xff]   ;;  %v6637_v28 = vld [vmem:[#allocation5 + $0x118c] ss:$16 sps:$4 sm:$0xff]  }
 0x242   :  { %4202 = vmatprep.subr.bf16.mxu0 %v6550_v21  ;;  %4612 = vmatprep.subr.bf16.mxu1 %v6553_v45  ;;  %v6632_v21 = vld [vmem:[#allocation5 + $0x1180] ss:$16 sps:$4 sm:$0xff]   ;;  %v6635_v45 = vld [vmem:[#allocation5 + $0x1188] ss:$16 sps:$4 sm:$0xff]  }
 0x245   :  { %4203 = vmatpush1.bf16.msra.mxu0 %v6548_v46  ;;  %4613 = vmatpush1.bf16.msra.mxu1 %v6551_v47  ;;  %v6640_v46 = vld [vmem:[#allocation5 + $0x11a4] ss:$16 sps:$4 sm:$0xff]   ;;  %v6643_v47 = vld [vmem:[#allocation5 + $0x11ac] ss:$16 sps:$4 sm:$0xff]  }
 0x246   :  { %4204 = vmatprep.subr.bf16.mxu0 %v6556_v48  ;;  %4614 = vmatprep.subr.bf16.mxu1 %v6559_v36  ;;  %v6638_v48 = vld [vmem:[#allocation5 + $0x11a0] ss:$16 sps:$4 sm:$0xff]   ;;  %v6641_v36 = vld [vmem:[#allocation5 + $0x11a8] ss:$16 sps:$4 sm:$0xff]  }
 0x249   :  { %4205 = vmatpush1.bf16.msra.mxu0 %v6554_v38  ;;  %4615 = vmatpush1.bf16.msra.mxu1 %v6557_v54  ;;  %v6646_v38 = vld [vmem:[#allocation5 + $0x11c4] ss:$16 sps:$4 sm:$0xff]   ;;  %v6649_v54 = vld [vmem:[#allocation5 + $0x11cc] ss:$16 sps:$4 sm:$0xff]  }
 0x24a   :  { %4215 = vmatprep.subr.bf16.mxu0 %v6562_v55  ;;  %4625 = vmatprep.subr.bf16.mxu1 %v6565_v56  ;;  %v6644_v55 = vld [vmem:[#allocation5 + $0x11c0] ss:$16 sps:$4 sm:$0xff]   ;;  %v6647_v56 = vld [vmem:[#allocation5 + $0x11c8] ss:$16 sps:$4 sm:$0xff]  }
 0x24c   :  { %4207 = vmatmul.mubr.bf16.vlgmr.msra.gmra.mrb[0].mxu0 %v802_v40  ;;  %4617 = vmatmul.mubr.bf16.vlgmr.msra.gmra.mrb[0].mxu1 %v802_v40  ;;  %v6655_v40 = vld [vmem:[#allocation5 + $0x11ec] ss:$16 sps:$4 sm:$0xff]  }
 0x24d   :  { %4216 = vmatpush1.bf16.msra.mxu0 %v6560_v58  ;;  %4626 = vmatpush1.bf16.msra.mxu1 %v6563_v59  ;;  %v6650_v58 = vld [vmem:[#allocation5 + $0x11e0] ss:$16 sps:$4 sm:$0xff]   ;;  %v6653_v59 = vld [vmem:[#allocation5 + $0x11e8] ss:$16 sps:$4 sm:$0xff]  }
 0x24e   :  { %4217 = vmatprep.subr.bf16.mxu0 %v6568_v60  ;;  %4627 = vmatprep.subr.bf16.mxu1 %v6571_v61  ;;  %v6658_v60 = vld [vmem:[#allocation5 + $0x1204] ss:$16 sps:$4 sm:$0xff]   ;;  %v6661_v61 = vld [vmem:[#allocation5 + $0x120c] ss:$16 sps:$4 sm:$0xff]  }
 0x24f   :  { %4247 = vmatprep.mubr.bf16.mxu0 %v826_v50  ;;  %4657 = vmatprep.mubr.bf16.mxu1 %v826_v50  ;;  %v7004_v50 = vrot.slane %v6995_v53, %v6916_v49  ;;  %v6670_v49 = vld [vmem:[#allocation5 + $0x1244] ss:$16 sps:$4 sm:$0xff]   ;;  %v6673_v53 = vld [vmem:[#allocation5 + $0x124c] ss:$16 sps:$4 sm:$0xff]  }
 0x251   :  { %4218 = vmatpush1.bf16.msra.mxu0 %v6566_v62  ;;  %4628 = vmatpush1.bf16.msra.mxu1 %v6569_v63  ;;  %v6656_v62 = vld [vmem:[#allocation5 + $0x1200] ss:$16 sps:$4 sm:$0xff]   ;;  %v6659_v63 = vld [vmem:[#allocation5 + $0x1208] ss:$16 sps:$4 sm:$0xff]  }
 0x252   :  { %4219 = vmatprep.subr.bf16.mxu0 %v6574_v0  ;;  %4629 = vmatprep.subr.bf16.mxu1 %v6577_v51  ;;  %v6664_v0 = vld [vmem:[#allocation5 + $0x1224] ss:$16 sps:$4 sm:$0xff]   ;;  %v6667_v51 = vld [vmem:[#allocation5 + $0x122c] ss:$16 sps:$4 sm:$0xff]  }
 0x255   :  { %4220 = vmatpush1.bf16.msra.mxu0 %v6572_v1  ;;  %4630 = vmatpush1.bf16.msra.mxu1 %v6575_v2  ;;  %v6662_v1 = vld [vmem:[#allocation5 + $0x1220] ss:$16 sps:$4 sm:$0xff]   ;;  %v6665_v2 = vld [vmem:[#allocation5 + $0x1228] ss:$16 sps:$4 sm:$0xff]  }
 0x256   :  { %4221 = vmatprep.subr.bf16.mxu0 %v6580_v3  ;;  %4631 = vmatprep.subr.bf16.mxu1 %v6583_v4  ;;  %v6833_v3 = vmov 0   ;;  %v6668_v4 = vld [vmem:[#allocation5 + $0x1240] ss:$16 sps:$4 sm:$0xff]  }
 0x259   :  { %4222 = vmatpush1.bf16.msra.mxu0 %v6578_v5  ;;  %4632 = vmatpush1.bf16.msra.mxu1 %v6581_v6  ;;  %v6671_v5 = vld [vmem:[#allocation5 + $0x1248] ss:$16 sps:$4 sm:$0xff]   ;;  %v6676_v6 = vld [vmem:[#allocation5 + $0x1264] ss:$16 sps:$4 sm:$0xff]  }
 0x25a   :  { %4223 = vmatprep.subr.bf16.mxu0 %v6586_v7  ;;  %4633 = vmatprep.subr.bf16.mxu1 %v6589_v8  ;;  %v6679_v7 = vld [vmem:[#allocation5 + $0x126c] ss:$16 sps:$4 sm:$0xff]   ;;  %v6674_v8 = vld [vmem:[#allocation5 + $0x1260] ss:$16 sps:$4 sm:$0xff]  }
 0x25d   :  { %4224 = vmatpush1.bf16.msra.mxu0 %v6584_v9  ;;  %4634 = vmatpush1.bf16.msra.mxu1 %v6587_v10  ;;  %v6677_v9 = vld [vmem:[#allocation5 + $0x1268] ss:$16 sps:$4 sm:$0xff]   ;;  %v6682_v10 = vld [vmem:[#allocation5 + $0x1284] ss:$16 sps:$4 sm:$0xff]  }
 0x25e   :  { %4225 = vmatprep.subr.bf16.mxu0 %v6592_v11  ;;  %4635 = vmatprep.subr.bf16.mxu1 %v6595_v12  ;;  %v6685_v11 = vld [vmem:[#allocation5 + $0x128c] ss:$16 sps:$4 sm:$0xff]   ;;  %v6680_v12 = vld [vmem:[#allocation5 + $0x1280] ss:$16 sps:$4 sm:$0xff]  }
 0x261   :  { %4226 = vmatpush1.bf16.msra.mxu0 %v6590_v14  ;;  %4636 = vmatpush1.bf16.msra.mxu1 %v6593_v16  ;;  %v6683_v14 = vld [vmem:[#allocation5 + $0x1288] ss:$16 sps:$4 sm:$0xff]   ;;  %v6688_v16 = vld [vmem:[#allocation5 + $0x12a4] ss:$16 sps:$4 sm:$0xff]  }
 0x262   :  { %4227 = vmatprep.subr.bf16.mxu0 %v6598_v17  ;;  %4637 = vmatprep.subr.bf16.mxu1 %v6601_v18  ;;  %v6691_v17 = vld [vmem:[#allocation5 + $0x12ac] ss:$16 sps:$4 sm:$0xff]   ;;  %v6686_v18 = vld [vmem:[#allocation5 + $0x12a0] ss:$16 sps:$4 sm:$0xff]  }
 0x265   :  { %4228 = vmatpush1.bf16.msra.mxu0 %v6596_v19  ;;  %4638 = vmatpush1.bf16.msra.mxu1 %v6599_v52  ;;  %v6689_v19 = vld [vmem:[#allocation5 + $0x12a8] ss:$16 sps:$4 sm:$0xff]   ;;  %v6694_v52 = vld [vmem:[#allocation5 + $0x12c4] ss:$16 sps:$4 sm:$0xff]  }
 0x266   :  { %4229 = vmatprep.subr.bf16.mxu0 %v6604_v20  ;;  %4639 = vmatprep.subr.bf16.mxu1 %v6607_v22  ;;  %v6697_v20 = vld [vmem:[#allocation5 + $0x12cc] ss:$16 sps:$4 sm:$0xff]   ;;  %v6692_v22 = vld [vmem:[#allocation5 + $0x12c0] ss:$16 sps:$4 sm:$0xff]  }
 0x269   :  { %4230 = vmatpush1.bf16.msra.mxu0 %v6602_v23  ;;  %4640 = vmatpush1.bf16.msra.mxu1 %v6605_v24  ;;  %v6695_v23 = vld [vmem:[#allocation5 + $0x12c8] ss:$16 sps:$4 sm:$0xff]   ;;  %v6700_v24 = vld [vmem:[#allocation5 + $0x12e4] ss:$16 sps:$4 sm:$0xff]  }
 0x26a   :  { %4231 = vmatprep.subr.bf16.mxu0 %v6610_v26  ;;  %4641 = vmatprep.subr.bf16.mxu1 %v6613_v13  ;;  %v6703_v26 = vld [vmem:[#allocation5 + $0x12ec] ss:$16 sps:$4 sm:$0xff]  }
 0x26b   :  { %v4727_v13 = vld [vmem:[%s7224_s3 + $0x80] sm:$0xff] }
 0x26d   :  { %4232 = vmatpush1.bf16.msra.mxu0 %v6608_v29  ;;  %4642 = vmatpush1.bf16.msra.mxu1 %v6611_v30  ;;  %v4728_v29 = vld [vmem:[%s7224_s3 + $0x88] sm:$0xff]  ;;  %v4759_v30 = vld [vmem:[%s7224_s3 + $0x180] sm:$0xff] }
 0x26e   :  { %4233 = vmatprep.subr.bf16.mxu0 %v6616_v31  ;;  %4643 = vmatprep.subr.bf16.mxu1 %v6619_v32  ;;  %v4760_v31 = vld [vmem:[%s7224_s3 + $0x188] sm:$0xff]  ;;  %v6698_v32 = vld [vmem:[#allocation5 + $0x12e0] ss:$16 sps:$4 sm:$0xff]  }
 0x271   :  { %4234 = vmatpush1.bf16.msra.mxu0 %v6614_v15  ;;  %4644 = vmatpush1.bf16.msra.mxu1 %v6617_v33  ;;  %v6701_v15 = vld [vmem:[#allocation5 + $0x12e8] ss:$16 sps:$4 sm:$0xff]   ;;  %v4711_v33 = vld [vmem:[%s7224_s3] sm:$0xff] }
 0x272   :  { %4235 = vmatprep.subr.bf16.mxu0 %v6622_v34  ;;  %4645 = vmatprep.subr.bf16.mxu1 %v6625_v35  ;;  %v4712_v34 = vld [vmem:[%s7224_s3 + $0x8] sm:$0xff]  ;;  %v5641_v35 = vpack.c.bf16 %v4728_v29, %v4727_v13  ;;  %v4769_v13 = vld [vmem:[%s7224_s3 + $0x1d0] sm:$0xff]  ;;  %v4770_v29 = vld [vmem:[%s7224_s3 + $0x1d8] sm:$0xff] }
 0x275   :  { %4236 = vmatpush1.bf16.msra.mxu0 %v6620_v25  ;;  %4646 = vmatpush1.bf16.msra.mxu1 %v6623_v37  ;;  %v5673_v25 = vpack.c.bf16 %v4760_v31, %v4759_v30  ;;  %v4743_v37 = vld [vmem:[%s7224_s3 + $0x100] sm:$0xff] }
 0x276   :  { %4237 = vmatprep.subr.bf16.mxu0 %v6628_v27  ;;  %4647 = vmatprep.subr.bf16.mxu1 %v6631_v39  ;;  %v4744_v27 = vld [vmem:[%s7224_s3 + $0x108] sm:$0xff]  ;;  %v4729_v39 = vld [vmem:[%s7224_s3 + $0x90] sm:$0xff] }
 0x279   :  { %4238 = vmatpush1.bf16.msra.mxu0 %v6626_v41  ;;  %4648 = vmatpush1.bf16.msra.mxu1 %v6629_v43  ;;  %v4730_v41 = vld [vmem:[%s7224_s3 + $0x98] sm:$0xff]  ;;  %v4761_v43 = vld [vmem:[%s7224_s3 + $0x190] sm:$0xff] }
 0x27a   :  { %4239 = vmatprep.subr.bf16.mxu0 %v6634_v44  ;;  %4649 = vmatprep.subr.bf16.mxu1 %v6637_v28  ;;  %v4762_v44 = vld [vmem:[%s7224_s3 + $0x198] sm:$0xff]  ;;  %v827_v28 = vcombine.high %v7004_v50, %v7004_v50 }
 0x27d   :  { %4240 = vmatpush1.bf16.msra.mxu0 %v6632_v21  ;;  %4650 = vmatpush1.bf16.msra.mxu1 %v6635_v45  ;;  %v5643_v21 = vpack.c.bf16 %v4712_v34, %v4711_v33  ;;  %v5675_v45 = vpack.c.bf16 %v4744_v27, %v4743_v37  ;;  %v5693_v34 = vpack.c.bf16 %v4770_v29, %v4769_v13  ;;  %v4739_v37 = vld [vmem:[%s7224_s3 + $0xe0] sm:$0xff]  ;;  %v4740_v27 = vld [vmem:[%s7224_s3 + $0xe8] sm:$0xff] }
 0x27e   :  { %4241 = vmatprep.subr.bf16.mxu0 %v6640_v46  ;;  %4651 = vmatprep.subr.bf16.mxu1 %v6643_v47  ;;  %v4713_v46 = vld [vmem:[%s7224_s3 + $0x10] sm:$0xff]  ;;  %v4714_v47 = vld [vmem:[%s7224_s3 + $0x18] sm:$0xff] }
 0x281   :  { %4242 = vmatpush1.bf16.msra.mxu0 %v6638_v48  ;;  %4652 = vmatpush1.bf16.msra.mxu1 %v6641_v36  ;;  %v5645_v48 = vpack.c.bf16 %v4730_v41, %v4729_v39  ;;  %v5677_v36 = vpack.c.bf16 %v4762_v44, %v4761_v43  ;;  %v4771_v39 = vld [vmem:[%s7224_s3 + $0x1e0] sm:$0xff]  ;;  %v4772_v41 = vld [vmem:[%s7224_s3 + $0x1e8] sm:$0xff] }
 0x282   :  { %4243 = vmatprep.subr.bf16.mxu0 %v6646_v38  ;;  %4653 = vmatprep.subr.bf16.mxu1 %v6649_v54  ;;  %v4745_v38 = vld [vmem:[%s7224_s3 + $0x110] sm:$0xff]  ;;  %v4746_v54 = vld [vmem:[%s7224_s3 + $0x118] sm:$0xff] }
 0x285   :  { %4244 = vmatpush1.bf16.msra.mxu0 %v6644_v55  ;;  %4654 = vmatpush1.bf16.msra.mxu1 %v6647_v56  ;;  %v4731_v55 = vld [vmem:[%s7224_s3 + $0xa0] sm:$0xff]  ;;  %v4732_v56 = vld [vmem:[%s7224_s3 + $0xa8] sm:$0xff] }
 0x286   :  { %4245 = vmatprep.subr.bf16.mxu0 %v6652_v57  ;;  %4655 = vmatprep.subr.bf16.mxu1 %v6655_v40  ;;  %v4763_v57 = vld [vmem:[%s7224_s3 + $0x1a0] sm:$0xff]  ;;  %v4764_v40 = vld [vmem:[%s7224_s3 + $0x1a8] sm:$0xff] }
 0x289   :  { %4246 = vmatpush1.bf16.msra.mxu0 %v6650_v58  ;;  %4656 = vmatpush1.bf16.msra.mxu1 %v6653_v59  ;;  %v5647_v58 = vpack.c.bf16 %v4714_v47, %v4713_v46  ;;  %v5679_v59 = vpack.c.bf16 %v4746_v54, %v4745_v38  ;;  %v4724_v46 = vld [vmem:[%s7224_s3 + $0x68] sm:$0xff]  ;;  %v4755_v47 = vld [vmem:[%s7224_s3 + $0x160] sm:$0xff]  ;;  %v4741_v54 = vld [vmem:[%s7224_s3 + $0xf0] sm:$0xff] }
 0x28a   :  { %4256 = vmatprep.subr.bf16.mxu0 %v6658_v60  ;;  %4666 = vmatprep.subr.bf16.mxu1 %v6661_v61  ;;  %v4715_v60 = vld [vmem:[%s7224_s3 + $0x20] sm:$0xff]  ;;  %v4716_v61 = vld [vmem:[%s7224_s3 + $0x28] sm:$0xff] }
 0x28c   :  { %4248 = vmatmul.mubr.bf16.vlgmr.msra.gmra.mrb[0].mxu0 %v7004_v50  ;;  %4658 = vmatmul.mubr.bf16.vlgmr.msra.gmra.mrb[0].mxu1 %v7004_v50  ;;  %v5649_v50 = vpack.c.bf16 %v4732_v56, %v4731_v55  ;;  %v4742_v55 = vld [vmem:[%s7224_s3 + $0xf8] sm:$0xff]  ;;  %v4773_v56 = vld [vmem:[%s7224_s3 + $0x1f0] sm:$0xff] }
 0x28d   :  { %4257 = vmatpush1.bf16.msra.mxu0 %v6656_v62  ;;  %4667 = vmatpush1.bf16.msra.mxu1 %v6659_v63  ;;  %v5681_v62 = vpack.c.bf16 %v4764_v40, %v4763_v57  ;;  %v4747_v63 = vld [vmem:[%s7224_s3 + $0x120] sm:$0xff]  ;;  %v5669_v57 = vpack.c.bf16 %v4742_v55, %v4741_v54  ;;  %v4774_v40 = vld [vmem:[%s7224_s3 + $0x1f8] sm:$0xff] }
 0x28e   :  { %4258 = vmatprep.subr.bf16.mxu0 %v6664_v0  ;;  %4668 = vmatprep.subr.bf16.mxu1 %v6667_v51  ;;  %v4748_v0 = vld [vmem:[%s7224_s3 + $0x128] sm:$0xff]  ;;  %v4733_v51 = vld [vmem:[%s7224_s3 + $0xb0] sm:$0xff] }
 0x28f   :  { %4288 = vmatprep.mubr.bf16.mxu0 %v6833_v3  ;;  %4698 = vmatprep.mubr.bf16.mxu1 %v6833_v3  ;;  %v5683_v3 = vpack.c.bf16 %v4748_v0, %v4747_v63  ;;  %v686_v0 = vsub.s32 0, %v6913_v42 }
 0x291   :  { %4259 = vmatpush1.bf16.msra.mxu0 %v6662_v1  ;;  %4669 = vmatpush1.bf16.msra.mxu1 %v6665_v2  ;;  %v4734_v1 = vld [vmem:[%s7224_s3 + $0xb8] sm:$0xff]  ;;  %v4765_v2 = vld [vmem:[%s7224_s3 + $0x1b0] sm:$0xff] }
 0x292   :  { %4260 = vmatprep.subr.bf16.mxu0 %v6670_v49  ;;  %4670 = vmatprep.subr.bf16.mxu1 %v6673_v53  ;;  %v4766_v49 = vld [vmem:[%s7224_s3 + $0x1b8] sm:$0xff]  ;;  %v5651_v53 = vpack.c.bf16 %v4716_v61, %v4715_v60  ;;  %v5701_v60 = vpack.c.bf16 %v4774_v40, %v4773_v56 }
 0x295   :  { %4261 = vmatpush1.bf16.msra.mxu0 %v6668_v4  ;;  %4671 = vmatpush1.bf16.msra.mxu1 %v6671_v5  ;;  %v4717_v4 = vld [vmem:[%s7224_s3 + $0x30] sm:$0xff]  ;;  %v4718_v5 = vld [vmem:[%s7224_s3 + $0x38] sm:$0xff] }
 0x296   :  { %4262 = vmatprep.subr.bf16.mxu0 %v6676_v6  ;;  %4672 = vmatprep.subr.bf16.mxu1 %v6679_v7  ;;  %v5653_v6 = vpack.c.bf16 %v4734_v1, %v4733_v51  ;;  %v5685_v7 = vpack.c.bf16 %v4766_v49, %v4765_v2  ;;  %v694_v51 = vsub.s32 2, %v6913_v42  ;;  %v682_v1 = vld [vmem:[#allocation7] sm:$0xf]  ;;  %v690_v2 = vsub.s32 1, %v6913_v42 }
 0x297   :  { %v698_v49 = vsub.s32 3, %v6913_v42 }
 0x299   :  { %4263 = vmatpush1.bf16.msra.mxu0 %v6674_v8  ;;  %4673 = vmatpush1.bf16.msra.mxu1 %v6677_v9  ;;  %v4749_v8 = vld [vmem:[%s7224_s3 + $0x130] sm:$0xff]  ;;  %v4750_v9 = vld [vmem:[%s7224_s3 + $0x138] sm:$0xff] }
 0x29a   :  { %4264 = vmatprep.subr.bf16.mxu0 %v6682_v10  ;;  %4674 = vmatprep.subr.bf16.mxu1 %v6685_v11  ;;  %v4735_v10 = vld [vmem:[%s7224_s3 + $0xc0] sm:$0xff]  ;;  %v4736_v11 = vld [vmem:[%s7224_s3 + $0xc8] sm:$0xff] }
 0x29d   :  { %4265 = vmatpush1.bf16.msra.mxu0 %v6680_v12  ;;  %4675 = vmatpush1.bf16.msra.mxu1 %v6683_v14  ;;  %v4767_v12 = vld [vmem:[%s7224_s3 + $0x1c0] sm:$0xff]  ;;  %v4768_v14 = vld [vmem:[%s7224_s3 + $0x1c8] sm:$0xff] }
 0x29e   :  { %4266 = vmatprep.subr.bf16.mxu0 %v6688_v16  ;;  %4676 = vmatprep.subr.bf16.mxu1 %v6691_v17  ;;  %v5655_v16 = vpack.c.bf16 %v4718_v5, %v4717_v4  ;;  %v5687_v17 = vpack.c.bf16 %v4750_v9, %v4749_v8  ;;  %v691_v4 = vrot.slane %v682_v1, %v690_v2 }
 0x29f   :  { %v699_v5 = vrot.slane %v682_v1, %v698_v49 }
 0x2a1   :  { %4267 = vmatpush1.bf16.msra.mxu0 %v6686_v18  ;;  %4677 = vmatpush1.bf16.msra.mxu1 %v6689_v19  ;;  %v4719_v18 = vld [vmem:[%s7224_s3 + $0x40] sm:$0xff]  ;;  %v4720_v19 = vld [vmem:[%s7224_s3 + $0x48] sm:$0xff] }
 0x2a2   :  { %4268 = vmatprep.subr.bf16.mxu0 %v6694_v52  ;;  %4678 = vmatprep.subr.bf16.mxu1 %v6697_v20  ;;  %v5657_v52 = vpack.c.bf16 %v4736_v11, %v4735_v10  ;;  %v5689_v20 = vpack.c.bf16 %v4768_v14, %v4767_v12  ;;  %v5659_v30 = vpack.c.bf16 %v4720_v19, %v4719_v18 }
 0x2a5   :  { %4269 = vmatpush1.bf16.msra.mxu0 %v6692_v22  ;;  %4679 = vmatpush1.bf16.msra.mxu1 %v6695_v23  ;;  %v4751_v22 = vld [vmem:[%s7224_s3 + $0x140] sm:$0xff]  ;;  %v4752_v23 = vld [vmem:[%s7224_s3 + $0x148] sm:$0xff] }
 0x2a6   :  { %4270 = vmatprep.subr.bf16.mxu0 %v6700_v24  ;;  %4680 = vmatprep.subr.bf16.mxu1 %v6703_v26  ;;  %v4737_v24 = vld [vmem:[%s7224_s3 + $0xd0] sm:$0xff]  ;;  %v4738_v26 = vld [vmem:[%s7224_s3 + $0xd8] sm:$0xff]  ;;  %v5691_v31 = vpack.c.bf16 %v4752_v23, %v4751_v22 }
 0x2a7   :  { %v5661_v33 = vpack.c.bf16 %v4738_v26, %v4737_v24  ;;  %v5570_v26 = vld [vmem:[#allocation8] ss:$0 sm:$0xff] }
 0x2a9   :  { %4271 = vmatpush1.bf16.msra.mxu0 %v6698_v32  ;;  %4681 = vmatpush1.bf16.msra.mxu1 %v6701_v15  ;;  %v4721_v32 = vld [vmem:[%s7224_s3 + $0x50] sm:$0xff]  ;;  %v4722_v15 = vld [vmem:[%s7224_s3 + $0x58] sm:$0xff] }
 0x2aa   :  { %5642 = vmatprep.subr.bf16.mxu0 %v5641_v35  ;;  %5674 = vmatprep.subr.bf16.mxu1 %v5673_v25  ;;  %v4753_v35 = vld [vmem:[%s7224_s3 + $0x150] sm:$0xff]  ;;  %v4754_v25 = vld [vmem:[%s7224_s3 + $0x158] sm:$0xff]  ;;  %v5663_v43 = vpack.c.bf16 %v4722_v15, %v4721_v32 }
 0x2ab   :  { %v5695_v44 = vpack.c.bf16 %v4754_v25, %v4753_v35 }
 0x2ac   :  { %4289 = vmatmul.mubr.bf16.vlgmr.msra.gmra.mrb[0].mxu0 %v827_v28  ;;  %4699 = vmatmul.mubr.bf16.vlgmr.msra.gmra.mrb[0].mxu1 %v827_v28  ;;  %v5665_v28 = vpack.c.bf16 %v4740_v27, %v4739_v37 }
 0x2ad   :  { %5644 = vmatpush3.bf16.msra.mxu0 %v5643_v21  ;;  %5676 = vmatpush3.bf16.msra.mxu1 %v5675_v45  ;;  %v5697_v21 = vpack.c.bf16 %v4772_v41, %v4771_v39  ;;  %v4723_v45 = vld [vmem:[%s7224_s3 + $0x60] sm:$0xff] }
 0x2ae   :  { %5646 = vmatprep.subr.bf16.mxu0 %v5645_v48  ;;  %5678 = vmatprep.subr.bf16.mxu1 %v5677_v36  ;;  %v5667_v48 = vpack.c.bf16 %v4724_v46, %v4723_v45  ;;  %v4756_v36 = vld [vmem:[%s7224_s3 + $0x168] sm:$0xff] }
 0x2af   :  { %v5699_v38 = vpack.c.bf16 %v4756_v36, %v4755_v47 }
 0x2b1   :  { %5648 = vmatpush3.bf16.msra.mxu0 %v5647_v58  ;;  %5680 = vmatpush3.bf16.msra.mxu1 %v5679_v59  ;;  %v4725_v58 = vld [vmem:[%s7224_s3 + $0x70] sm:$0xff]  ;;  %v4726_v59 = vld [vmem:[%s7224_s3 + $0x78] sm:$0xff] }
 0x2b2   :  { %5650 = vmatprep.subr.bf16.mxu0 %v5649_v50  ;;  %5682 = vmatprep.subr.bf16.mxu1 %v5681_v62  ;;  %v5671_v61 = vpack.c.bf16 %v4726_v59, %v4725_v58  ;;  %v4757_v50 = vld [vmem:[%s7224_s3 + $0x170] sm:$0xff]  ;;  %v4758_v62 = vld [vmem:[%s7224_s3 + $0x178] sm:$0xff]  ;;  %s6834_s3 = smov [#allocation10]  }
 0x2b3   :  { %v5703_v63 = vpack.c.bf16 %v4758_v62, %v4757_v50  ;;  %s4950_s27 = sshll.u32 %s6834_s3, 4  ;;  %s4951_s27 = int_to_ptr.vmem [resolvable:$true] %s4950_s27 }
 0x2b4   :  { %s6796_s28 = scalar_lea.vmem %s4951_s27, 32  ;;  %p6801_p5 = scmp.lt.s32.totalorder %s4951_s27, %s4951_s27 }
 0x2b5   :  { %5652 = vmatpush3.bf16.msra.mxu0 %v5651_v53  ;;  %5684 = vmatpush3.bf16.msra.mxu1 %v5683_v3  ;;  %v687_v53 = vrot.slane %v682_v1, %v686_v0  ;;  %v695_v3 = vrot.slane %v682_v1, %v694_v51  ;;  %p6797_p4 = scmp.ne.s32.totalorder %s4951_s27, %s6796_s28  ;;  %p6802_p6 = scmp.lt.s32.totalorder %s6796_s28, %s6796_s28 }
 0x2b6   :  { %5654 = vmatprep.subr.bf16.mxu0 %v5653_v6  ;;  %5686 = vmatprep.subr.bf16.mxu1 %v5685_v7 }
 0x2b7   :  { %p6803_p7 = por %p6802_p6, %p6801_p5 }
 0x2b9   :  { %5656 = vmatpush3.bf16.msra.mxu0 %v5655_v16  ;;  %5688 = vmatpush3.bf16.msra.mxu1 %v5687_v17  ;;  %p6804_p8 = pnand %p6803_p7, %p6797_p4 }
 0x2ba   :  { %5658 = vmatprep.subr.bf16.mxu0 %v5657_v52  ;;  %5690 = vmatprep.subr.bf16.mxu1 %v5689_v20 }
 0x2bd   :  { %5660 = vmatpush3.bf16.msra.mxu0 %v5659_v30  ;;  %5692 = vmatpush3.bf16.msra.mxu1 %v5691_v31 }
 0x2be   :  { %5662 = vmatprep.subr.bf16.mxu0 %v5661_v33  ;;  %5694 = vmatprep.subr.bf16.mxu1 %v5693_v34 }
 0x2c1   :  { %5664 = vmatpush3.bf16.msra.mxu0 %v5663_v43  ;;  %5696 = vmatpush3.bf16.msra.mxu1 %v5695_v44 }
 0x2c2   :  { %5666 = vmatprep.subr.bf16.mxu0 %v5665_v28  ;;  %5698 = vmatprep.subr.bf16.mxu1 %v5697_v21 }
 0x2c5   :  { %5668 = vmatpush3.bf16.msra.mxu0 %v5667_v48  ;;  %5700 = vmatpush3.bf16.msra.mxu1 %v5699_v38 }
 0x2c6   :  { %5670 = vmatprep.subr.bf16.mxu0 %v5669_v57  ;;  %5702 = vmatprep.subr.bf16.mxu1 %v5701_v60 }
 0x2c9   :  { %5672 = vmatpush3.bf16.msra.mxu0 %v5671_v61  ;;  %5704 = vmatpush3.bf16.msra.mxu1 %v5703_v63 }
 0x37f   :  { %v4290_v6 = vpop.f32.mrb[0].mxu0  ;;  %v4700_v7 = vpop.f32.mrb[0].mxu1 }
 0x380   :  { %v5705_v8 = vadd.f32 %v4290_v6, %v687_v53  ;;  %v5707_v9 = vadd.f32 %v4700_v7, %v695_v3  ;;  %v4292_v10 = vpop.f32.mrb[1].mxu0  ;;  %v4702_v11 = vpop.f32.mrb[1].mxu1 }
 0x381   :  { %v5706_v12 = vadd.f32 %v4292_v10, %v691_v4  ;;  %v5708_v14 = vadd.f32 %v4702_v11, %v699_v5  ;;  %v4294_v16 = vpop.f32.mrb[2].mxu0  ;;  %v4704_v17 = vpop.f32.mrb[2].mxu1 }
 0x382   :  { %v4295_v18 = vpop.f32.mrb[3].mxu0  ;;  %v4705_v19 = vpop.f32.mrb[3].mxu1  ;;  %v4707_v22 = vmax.f32 %v5705_v8, 0.0  ;;  %v4709_v42 = vmax.f32 %v5707_v9, 0.0 }
 0x383   :  { %v4708_v52 = vmax.f32 %v5706_v12, 0.0  ;;  %v4710_v20 = vmax.f32 %v5708_v14, 0.0 }
 0x385   :  { %4846 = vmatprep.mubr.f32.mxu0 %v4708_v52  ;;  %4916 = vmatprep.mubr.f32.mxu1 %v4710_v20 }
 0x386   :  { %4847 = vmatmul.mubr.f32.vlgmr.msra.gmra.mrb[4].mxu0 %v4707_v22  ;;  %4917 = vmatmul.mubr.f32.vlgmr.msra.gmra.mrb[4].mxu1 %v4709_v42 }
 0x459   :  { %v5603_v23 = vpop.f32.mrb[4].mxu0  ;;  %v5638_v24 = vpop.f32.mrb[4].mxu1 }
 0x45a   :  { %v5604_v13 = vpop.f32.mrb[5].mxu0  ;;  %v5639_v29 = vpop.f32.mrb[5].mxu1 }
 0x45b   :  { %v5605_v30 = vadd.f32 %v5604_v13, %v5603_v23  ;;  %v5640_v31 = vadd.f32 %v5639_v29, %v5638_v24 }
 0x45d   :  { %v4849_v32 = vadd.f32 %v5605_v30, %v5570_v26 }
 0x45f   :  { %v4919_v15 = vadd.f32 %v5640_v31, %v4849_v32 }
 0x461   :  { %v4923_v33 = vsel %vm4922_vm0, %v4919_v15, -inf  ;;  %v4926_v34 = vsel %vm4922_vm0, %v4919_v15, inf }
 0x462   :  { %4924 = vmax.xlane.f32.xlu0 %v4923_v33 }
 0x466   :  { %4927 = vmin.xlane.f32.xlu0 %v4926_v34 }
 0x4ef   :  { %v4925_v35 = vpop.xlane.xlu0 %4924 }
 0x4f3   :  { %v4928_v25 = vpop.xlane.xlu0 %4927 }
 0x4f4   :  { %v4929_v37 = vsub.f32 %v4928_v25, %v4925_v35 }
 0x4f6   :  { %v4930_v27 = vmul.f32 1.442695, %v4929_v37 }
 0x4f8   :  { %6704 = vpow2.f32 %v4930_v27 }
 0x502   :  { %v6705_v39 = vpop.eup %6704 }
 0x503   :  { %v4932_v41 = vadd.f32 1.0, %v6705_v39  ;;  %v4935_v43 = vmul.f32 -0.5, %v6705_v39  ;;  %v4938_v28 = vand.u32 2147483647, %v6705_v39 }
 0x505   :  { %6706 = vlog2.f32 %v4932_v41  ;;  %v4936_v44 = vadd.f32 1.0, %v4935_v43  ;;  %vm4939_vm1 = vcmp.lt.f32.partialorder %v4938_v28, 0.0004427343 }
 0x507   :  { %v4937_v46 = vmul.f32 %v6705_v39, %v4936_v44 }
 0x50f   :  { %v6707_v21 = vpop.eup %6706 }
 0x510   :  { %v4934_v45 = vmul.f32 0.6931472, %v6707_v21 }
 0x512   :  { %v4940_v47 = vsel %vm4939_vm1, %v4937_v46, %v4934_v45 }
 0x513   :  { %v4941_v48 = vadd.f32 %v4940_v47, %v4925_v35 }
 0x515   :  { %v4942_v36 = vsub.f32 %v4919_v15, %v4941_v48 }
 0x517   :  { %4943 = vst.msk [vmem:[#allocation10] sm:$0x3] %vm4922_vm0, %v4942_v36 }
 0x518   :  { %6807 = shalt.err (!%p6804_p8)
}
 0x519   :  { %s6808_s30 = scalar_lea.hbm %s7226_s5, 32 }
 0x51a   :  { %p6809_p9 = scmp.ne.s32.totalorder %s7226_s5, %s6808_s30  ;;  %p6812_p10 = scmp.lt.u32.totalorder %s6808_s30, %s7226_s5 }
 0x51c   :  { %p6814_p11 = pnand %p6812_p10, %p6809_p9 }
 0x51e   :  { %6817 = shalt.err (!%p6814_p11)
}
 0x51f   :  { %4953 = dma.vmem_to_hbm [thread:$0]  %s4951_s27, 32, %s7226_s5, [#allocation4]  }
 0x520   :  { %6824 = dma.done.wait [#allocation4], 32  }
 0x521   :  { %6825 = vsyncadd [#allocation4], 4294967264 }
 0x522   :  { %4957 = vsyncpa [#allocation3], 1 }
 0x523   :  { %4958 = vsyncpa [#allocation6], 1 }
 0x524   :  { %4959 = vsyncpa [#allocation9], 1 }
 0x525   :  { %4960 = vsyncpa [#allocation4], 1 }

</bundles_post_ra>
